<compile_context>
chip_gen: v6e
topology: v6e:2x2x1
jax: 0.10.0
libtpu: 0.0.40
codegen_flags: <defaults>
</compile_context>

<pallas_src>
import math
from functools import partial

import jax
import jax.numpy as jnp
from jax.experimental import pallas as pl
from jax.experimental.pallas import tpu as pltpu


# ----------------------------------------------------------------------------
# Fused multi-head attention kernel (entire batch in one invocation)
# ----------------------------------------------------------------------------
def mha_kernel(x_ref, w_ref, b_ref, o_ref, *, batch, seq, num_heads, head_dim):
    B, T, NH, D = batch, seq, num_heads, head_dim
    NHD = NH * D

    x = x_ref[...]                                      # (B*T, D) f32

    # Fused QKV projection for all heads and the whole batch:
    # one lane-dense MXU matmul, bf16 operands, f32 accumulation.
    qkv = (jnp.dot(x.astype(jnp.bfloat16), w_ref[...],
                   preferred_element_type=jnp.float32)
           + b_ref[...])                                # (B*T, 3*NH*D) f32

    def heads(block):
        # (B*T, NH*D) -> (B*NH, T, D); heads folded into the batch dim so the
        # attention matmuls are plain leading-batch dot_generals.
        return jnp.transpose(
            block.reshape(B, T, NH, D), (0, 2, 1, 3)).reshape(B * NH, T, D)

    # Lane slices below start at multiples of 128 when NH*D == 128 (test config).
    q = heads(qkv[:, 0 * NHD:1 * NHD])                  # 1/sqrt(D) already folded in
    k = heads(qkv[:, 1 * NHD:2 * NHD])
    v = heads(qkv[:, 2 * NHD:3 * NHD])

    # Scores + softmax: MXU in bf16, softmax math in f32.
    s = jnp.einsum("bqd,bkd->bqk",
                   q.astype(jnp.bfloat16), k.astype(jnp.bfloat16),
                   preferred_element_type=jnp.float32)  # (B*NH, T, T)
    m = jnp.max(s, axis=-1, keepdims=True)
    p = jnp.exp(s - m)
    l = jnp.sum(p, axis=-1, keepdims=True)              # (B*NH, T, 1)

    # Deferred normalization: PV matmul on raw exponentials, then one
    # O(NH*T*D) multiply with an EUP reciprocal.
    o = jnp.einsum("bqk,bkd->bqd",
                   p.astype(jnp.bfloat16), v.astype(jnp.bfloat16),
                   preferred_element_type=jnp.float32)  # (B*NH, T, D)
    o = o * pl.reciprocal(l, approx=True)

    # torch.cat(outputs, dim=-1): heads concatenated along the feature axis;
    # single lane-dense (B*T, NH*D) store.
    o_ref[...] = jnp.transpose(
        o.reshape(B, NH, T, D), (0, 2, 1, 3)).reshape(B * T, NHD)


def multi_head_attention(x, w_fused, b_fused, num_heads):
    """x: (B, T, D) f32; w_fused: (D, 3*NH*D) bf16; b_fused: (1, 3*NH*D) f32."""
    B, T, D = x.shape
    NHD3 = w_fused.shape[1]
    NHD = NHD3 // 3
    head_dim = NHD // num_heads
    # Note: lane-dense fast path assumes NH*head_dim is a multiple of 128; other
    # configs remain correct but use masked stores / costlier relayouts.
    kernel = partial(mha_kernel, batch=B, seq=T,
                     num_heads=num_heads, head_dim=head_dim)
    out2d = pl.pallas_call(
        kernel,
        out_shape=jax.ShapeDtypeStruct((B * T, NHD), jnp.float32),
        in_specs=[
            pl.BlockSpec(memory_space=pltpu.MemorySpace.VMEM),
            pl.BlockSpec(memory_space=pltpu.MemorySpace.VMEM),
            pl.BlockSpec(memory_space=pltpu.MemorySpace.VMEM),
        ],
        out_specs=pl.BlockSpec(memory_space=pltpu.MemorySpace.VMEM),
    )(x.reshape(B * T, D), w_fused, b_fused)
    return out2d.reshape(B, T, NHD)


# ----------------------------------------------------------------------------
# Parameter prep: stack per-head weights, fold the 1/sqrt(D) scale into Wq/bq
# ----------------------------------------------------------------------------
def fuse_mha_params(wq, wk, wv, bq, bk, bv):
    """wq/wk/wv: (NH, D_in, D_out) in (in, out) layout; bq/bk/bv: (NH, D_out).
    Returns (w_fused bf16 (D, 3*NH*D), b_fused f32 (1, 3*NH*D))."""
    NH, D, _ = wq.shape
    scale = 1.0 / math.sqrt(D)

    def stack(w):                                        # (NH, D, D) -> (D, NH*D)
        return jnp.transpose(w, (1, 0, 2)).reshape(D, NH * D)

    w_fused = jnp.concatenate([stack(wq) * scale, stack(wk), stack(wv)], axis=-1)
    b_fused = jnp.concatenate(
        [(bq * scale).reshape(-1), bk.reshape(-1), bv.reshape(-1)]
    ).reshape(1, -1)
    return w_fused.astype(jnp.bfloat16), b_fused.astype(jnp.float32)


# ----------------------------------------------------------------------------
# Pure-JAX reference (mirrors the PyTorch module exactly, in f32)
# ----------------------------------------------------------------------------
def mha_reference(x, wq, wk, wv, bq, bk, bv):
    D = x.shape[-1]
    outs = []
    for h in range(wq.shape[0]):
        q = x @ wq[h] + bq[h]
        k = x @ wk[h] + bk[h]
        v = x @ wv[h] + bv[h]
        s = jnp.einsum("btd,bsd->bts", q, k) / math.sqrt(D)
        w = jax.nn.softmax(s, axis=-1)
        outs.append(jnp.einsum("bts,bsd->btd", w, v))
    return jnp.concatenate(outs, axis=-1)


if __name__ == "__main__":
    hidden_size = 16     # per-head Linear(in=out=hidden_size)
    num_heads = 8        # NH * hidden_size = 128 -> lane-dense output
    B, T = 2, 8

    key = jax.random.PRNGKey(0)
    k_x, k_q, k_k, k_v, k_bq, k_bk, k_bv = jax.random.split(key, 7)

    def u(k, shape, s=0.25):
        return jax.random.uniform(k, shape, jnp.float32, -s, s)

    x = jax.random.normal(k_x, (B, T, hidden_size), dtype=jnp.float32)
    wq = u(k_q, (num_heads, hidden_size, hidden_size))
    wk = u(k_k, (num_heads, hidden_size, hidden_size))
    wv = u(k_v, (num_heads, hidden_size, hidden_size))
    bq = u(k_bq, (num_heads, hidden_size))
    bk = u(k_bk, (num_heads, hidden_size))
    bv = u(k_bv, (num_heads, hidden_size))

    w_fused, b_fused = fuse_mha_params(wq, wk, wv, bq, bk, bv)

    out = multi_head_attention(x, w_fused, b_fused, num_heads)
    out = jax.block_until_ready(out)

    assert out.shape == (B, T, num_heads * hidden_size), out.shape
    assert bool(jnp.all(jnp.isfinite(out)))

    ref = mha_reference(x, wq, wk, wv, bq, bk, bv)
    max_err = float(jnp.max(jnp.abs(out - ref)))
    assert jnp.allclose(out, ref, atol=5e-2, rtol=5e-2), max_err

    print("KERNEL_OK")
</pallas_src>

<mosaic_0001>
module attributes {stable_mosaic.version = 11 : i64} {
  func.func @mha_kernel(%arg0: memref<16x16xf32, #tpu.memory_space<vmem>>, %arg1: memref<16x384xbf16, #tpu.memory_space<vmem>>, %arg2: memref<1x384xf32, #tpu.memory_space<vmem>>, %arg3: memref<16x128xf32, #tpu.memory_space<vmem>>) attributes {dimension_semantics = [], scalar_prefetch = 0 : i64, scratch_operands = 0 : i64, tpu.core_type = #tpu.core_type<tc>} {
    %c0 = arith.constant 0 : index
    %c0_0 = arith.constant 0 : index
    %0 = vector.load %arg0[%c0, %c0_0] : memref<16x16xf32, #tpu.memory_space<vmem>>, vector<16x16xf32>
    %1 = arith.truncf %0 : vector<16x16xf32> to vector<16x16xbf16>
    %c0_1 = arith.constant 0 : index
    %c0_2 = arith.constant 0 : index
    %2 = vector.load %arg1[%c0_1, %c0_2] : memref<16x384xbf16, #tpu.memory_space<vmem>>, vector<16x384xbf16>
    %cst = arith.constant dense<0.000000e+00> : vector<16x384xf32>
    %3 = tpu.matmul %1, %2, %cst {dimension_numbers = #tpu.dot_dimension_numbers<[1], [0], [0], [1], [0, 0, 1, 1], [], []>} : vector<16x16xbf16>, vector<16x384xbf16>, vector<16x384xf32> -> vector<16x384xf32>
    %c0_3 = arith.constant 0 : index
    %c0_4 = arith.constant 0 : index
    %4 = vector.load %arg2[%c0_3, %c0_4] : memref<1x384xf32, #tpu.memory_space<vmem>>, vector<1x384xf32>
    %5 = vector.broadcast %4 : vector<1x384xf32> to vector<16x384xf32>
    %6 = arith.addf %3, %5 : vector<16x384xf32>
    %7 = vector.extract_strided_slice %6 {offsets = [0, 0], sizes = [16, 128], strides = [1, 1]} : vector<16x384xf32> to vector<16x128xf32>
    %8 = vector.shape_cast %7 : vector<16x128xf32> to vector<2x8x8x16xf32>
    %9 = tpu.transpose %8, [0, 2, 1, 3] : vector<2x8x8x16xf32> -> vector<2x8x8x16xf32>
    %10 = vector.shape_cast %9 : vector<2x8x8x16xf32> to vector<16x8x16xf32>
    %11 = vector.extract_strided_slice %6 {offsets = [0, 128], sizes = [16, 128], strides = [1, 1]} : vector<16x384xf32> to vector<16x128xf32>
    %12 = vector.shape_cast %11 : vector<16x128xf32> to vector<2x8x8x16xf32>
    %13 = tpu.transpose %12, [0, 2, 1, 3] : vector<2x8x8x16xf32> -> vector<2x8x8x16xf32>
    %14 = vector.shape_cast %13 : vector<2x8x8x16xf32> to vector<16x8x16xf32>
    %15 = vector.extract_strided_slice %6 {offsets = [0, 256], sizes = [16, 128], strides = [1, 1]} : vector<16x384xf32> to vector<16x128xf32>
    %16 = vector.shape_cast %15 : vector<16x128xf32> to vector<2x8x8x16xf32>
    %17 = tpu.transpose %16, [0, 2, 1, 3] : vector<2x8x8x16xf32> -> vector<2x8x8x16xf32>
    %18 = vector.shape_cast %17 : vector<2x8x8x16xf32> to vector<16x8x16xf32>
    %19 = arith.truncf %10 : vector<16x8x16xf32> to vector<16x8x16xbf16>
    %20 = arith.truncf %14 : vector<16x8x16xf32> to vector<16x8x16xbf16>
    "tpu.trace_start"() <{level = 10 : i32, message = "bqd,bkd->bqk"}> : () -> ()
    %cst_5 = arith.constant dense<0.000000e+00> : vector<16x8x8xf32>
    %21 = tpu.matmul %19, %20, %cst_5 {dimension_numbers = #tpu.dot_dimension_numbers<[2], [2], [1], [1], [0, 0, 0, 1, 1, 1], [0], [0]>} : vector<16x8x16xbf16>, vector<16x8x16xbf16>, vector<16x8x8xf32> -> vector<16x8x8xf32>
    "tpu.trace_stop"() : () -> ()
    %cst_6 = arith.constant dense<0xFF800000> : vector<16x8xf32>
    %22 = vector.multi_reduction <maximumf>, %21, %cst_6 [2] : vector<16x8x8xf32> to vector<16x8xf32>
    %23 = vector.shape_cast %22 : vector<16x8xf32> to vector<16x8x1xf32>
    %24 = vector.broadcast %23 : vector<16x8x1xf32> to vector<16x8x8xf32>
    %25 = arith.subf %21, %24 : vector<16x8x8xf32>
    %26 = math.exp %25 : vector<16x8x8xf32>
    %cst_7 = arith.constant dense<0.000000e+00> : vector<16x8xf32>
    %27 = vector.multi_reduction <add>, %26, %cst_7 [2] : vector<16x8x8xf32> to vector<16x8xf32>
    %28 = vector.shape_cast %27 : vector<16x8xf32> to vector<16x8x1xf32>
    %29 = arith.truncf %26 : vector<16x8x8xf32> to vector<16x8x8xbf16>
    %30 = arith.truncf %18 : vector<16x8x16xf32> to vector<16x8x16xbf16>
    "tpu.trace_start"() <{level = 10 : i32, message = "bqk,bkd->bqd"}> : () -> ()
    %cst_8 = arith.constant dense<0.000000e+00> : vector<16x8x16xf32>
    %31 = tpu.matmul %29, %30, %cst_8 {dimension_numbers = #tpu.dot_dimension_numbers<[2], [1], [1], [2], [0, 0, 0, 1, 1, 2], [0], [0]>} : vector<16x8x8xbf16>, vector<16x8x16xbf16>, vector<16x8x16xf32> -> vector<16x8x16xf32>
    "tpu.trace_stop"() : () -> ()
    %32 = tpu.reciprocal %28 {approx = true} : vector<16x8x1xf32> -> vector<16x8x1xf32>
    %33 = vector.broadcast %32 : vector<16x8x1xf32> to vector<16x8x16xf32>
    %34 = arith.mulf %31, %33 : vector<16x8x16xf32>
    %35 = vector.shape_cast %34 : vector<16x8x16xf32> to vector<2x8x8x16xf32>
    %36 = tpu.transpose %35, [0, 2, 1, 3] : vector<2x8x8x16xf32> -> vector<2x8x8x16xf32>
    %37 = vector.shape_cast %36 : vector<2x8x8x16xf32> to vector<16x128xf32>
    %c0_9 = arith.constant 0 : index
    %c0_10 = arith.constant 0 : index
    %38 = vector.load %arg3[%c0_9, %c0_10] : memref<16x128xf32, #tpu.memory_space<vmem>>, vector<16x128xf32>
    tpu.vector_store %arg3[%c0_9, %c0_10], %37 {strides = array<i32>} : memref<16x128xf32, #tpu.memory_space<vmem>>, vector<16x128xf32>,
    return
  }
}

</mosaic_0001>

<bundles_post_ra>
// kernel: tpu_custom_call.1
= control target key start
LH: loop header
LB: loop body
LE: loop exit
PB: predicated region body
PF: predicated region fallthrough
CT: control target
= control target key end

     0   :  { %8 = vsyncpa [#allocation3], 0  ;;  %s5786_s0 = inlined_call_operand.hbm [shape: f32[16,16], index: 0, kind: input, shape index: {}]   ;;  %s5787_s1 = inlined_call_operand.hbm [shape: bf16[16,384], index: 1, kind: input, shape index: {}]   ;;  %s5788_s2 = inlined_call_operand.vmem [shape: f32[1,384], index: 2, kind: input, shape index: {}]   ;;  %s5789_s3 = inlined_call_operand.hbm [shape: f32[16,128], index: 3, kind: output, shape index: {}]  }
   0x1   :  { %9 = vsyncpa [#allocation6], 0 }
   0x2   :  { %10 = vsyncpa [#allocation4], 0  ;;  %s4808_s12 = smov [#allocation2]  }
   0x3   :  { %s16_s13 = sshll.u32 %s4808_s12, 4  ;;  %s17_s13 = int_to_ptr.vmem [resolvable:$true] %s16_s13 }
   0x4   :  { %s4750_s14 = scalar_lea.vmem %s17_s13, 256  ;;  %p4755_p1 = scmp.lt.s32.totalorder %s17_s13, %s17_s13 }
   0x5   :  { %p4751_p0 = scmp.ne.s32.totalorder %s17_s13, %s4750_s14  ;;  %p4756_p2 = scmp.lt.s32.totalorder %s4750_s14, %s4750_s14 }
   0x7   :  { %p4757_p3 = por %p4756_p2, %p4755_p1 }
   0x9   :  { %p4758_p4 = pnand %p4757_p3, %p4751_p0 }
   0xb   :  { %4761 = shalt.err (!%p4758_p4)
}
   0xc   :  { %s4809_s15 = smov 128   ;;  %s4810_s16 = smov 8  }
   0xd   :  { %22 = dma.hbm_to_vmem [thread:$0]  %s5786_s0, 256, %s17_s13, [#allocation3], %s4809_s15, %s4809_s15, %s4810_s16  }
   0xe   :  { %s4811_s19 = smov [#allocation5]  }
   0xf   :  { %s28_s20 = sshll.u32 %s4811_s19, 4  ;;  %s29_s20 = int_to_ptr.vmem [resolvable:$true] %s28_s20 }
  0x10   :  { %s4770_s21 = scalar_lea.vmem %s29_s20, 384  ;;  %p4775_p6 = scmp.lt.s32.totalorder %s29_s20, %s29_s20 }
  0x11   :  { %p4771_p5 = scmp.ne.s32.totalorder %s29_s20, %s4770_s21  ;;  %p4776_p7 = scmp.lt.s32.totalorder %s4770_s21, %s4770_s21 }
  0x13   :  { %p4777_p8 = por %p4776_p7, %p4775_p6 }
  0x15   :  { %p4778_p9 = pnand %p4777_p8, %p4771_p5 }
  0x17   :  { %4781 = shalt.err (!%p4778_p9)
}
  0x18   :  { %s4812_s22 = smov 192   ;;  %s4813_s23 = smov 12  }
  0x19   :  { %34 = dma.hbm_to_vmem [thread:$0]  %s5787_s1, 384, %s29_s20, [#allocation6], %s4812_s22, %s4812_s22, %s4813_s23  }
  0x1a   :  { %4802 = dma.done.wait [#allocation3], 256  }
  0x1b   :  { %4803 = vsyncadd [#allocation3], 4294967040 }
  0x1c   :  { %4804 = dma.done.wait [#allocation6], 384  }
  0x1d   :  { %4805 = vsyncadd [#allocation6], 4294966912  ;;  %v4814_v0 = vmov 0   ;;  %v4815_v1 = vmov 0.0   ;;  %vm4816_vm0 = vmmov 0   ;;  %v44_v4 = vld [vmem:[#allocation2] sm:$0xff]  ;;  %v53_v8 = vlaneseq }
  0x1e   :  { %120 = vmatprep.mubr.bf16.mxu0 %v4814_v0  ;;  %4457 = vmatprep.subr.bf16.mxu1 %v4815_v1  ;;  %v4674_v2 = vld [vmem:[#allocation5 + $0x4] ss:$12 sps:$4 sm:$0xff]   ;;  %v4676_v3 = vld [vmem:[#allocation5] ss:$12 sps:$4 sm:$0xff]   ;;  %v45_v5 = vld [vmem:[#allocation2 + $0x8] sm:$0xff]  ;;  %vm84_vm1 = vcmask 130048  }
  0x1f   :  { %4459 = vmatprep.mubr.msk.bf16.mxu1 %vm4816_vm0, %v4815_v1  ;;  %102 = vmatprep.subr.bf16.mxu0 %v4674_v2  ;;  %v46_v6 = vpack.c.bf16 %v45_v5, %v44_v4  ;;  %v4677_v7 = vld [vmem:[#allocation5 + $0x8] ss:$12 sps:$4 sm:$0xff]   ;;  %v4867_v9 = vshrl.u32 %v53_v8, 7  ;;  %v51_v11 = vld [vmem:[%s5788_s2] sm:$0x7]  ;;  %s4817_s26 = smov 80  }
  0x20   :  { %103 = vmatpush1.bf16.msra.mxu0 %v4676_v3  ;;  %4458 = vmatpush3.bf16.msra.mxu1 %v4677_v7  ;;  %s4818_s27 = smov 112   ;;  %s4819_s28 = smov 96   ;;  %v4824_v31 = vmov 1983009808   ;;  %v4825_v33 = vmov 1934713408  }
  0x21   :  { %4463 = vmatprep.subr.bf16.mxu0 %v4815_v1  ;;  %4469 = vmatprep.subr.bf16.mxu1 %v4815_v1  ;;  %v59_v10 = vsub.s32 1, %v4867_v9  ;;  %v55_v12 = vsub.s32 0, %v4867_v9  ;;  %s4820_s2 = smov 64   ;;  %s4821_s29 = smov 48   ;;  %v63_v23 = vsub.s32 2, %v4867_v9  ;;  %v219_v32 = vunpack.c.l.s4 %v4824_v31 }
  0x22   :  { %s4822_s30 = smov 32   ;;  %s4823_s4 = smov 16   ;;  %v283_v34 = vunpack.c.l.s4 %v4825_v33  ;;  %vm2884_vm2 = vcmask 1043456   ;;  %vm2704_vm3 = vcmask 64512   ;;  %vm4252_vm4 = vcmask 261120  }
  0x23   :  { %4293 = vmatmul.mubr.msk.bf16.vlgmr.msra.gmra.mxu0 %vm84_vm1, %v46_v6  ;;  %4460 = vmatmul.mubr.msk.bf16.vlgmr.msra.gmra.mxu1 %vm84_vm1, %v46_v6  ;;  %v60_v13 = vrot.slane %v51_v11, %v59_v10  ;;  %v56_v16 = vrot.slane %v51_v11, %v55_v12  ;;  %v64_v25 = vrot.slane %v51_v11, %v63_v23  ;;  %v220_v35 = vunpack.c.0.s8 %v219_v32  ;;  %s4826_s5 = smov [#allocation7]  }
  0x24   :  { %4465 = vmatprep.mubr.msk.bf16.mxu0 %vm4816_vm0, %v4815_v1  ;;  %4471 = vmatprep.mubr.msk.bf16.mxu1 %vm4816_vm0, %v4815_v1  ;;  %v284_v38 = vunpack.c.0.s8 %v283_v34  ;;  %vm4255_vm5 = vcmask 392192   ;;  %vm4258_vm6 = vcmask 523264   ;;  %vm4261_vm7 = vcmask 654336   ;;  %s4277_s6 = sshll.u32 %s4826_s5, 4  ;;  %s4278_s6 = int_to_ptr.vmem [resolvable:$true] %s4277_s6 }
  0x25   :  { %v4966_v39 = vsub.s32 %v220_v35, %v4867_v9  ;;  %vm4264_vm8 = vcmask 785408   ;;  %vm4267_vm9 = vcmask 916480   ;;  %s4782_s7 = scalar_lea.vmem %s4278_s6, 256  ;;  %p4787_p11 = scmp.lt.s32.totalorder %s4278_s6, %s4278_s6 }
  0x26   :  { %v4971_v46 = vsub.s32 %v284_v38, %v4867_v9  ;;  %p4783_p10 = scmp.ne.s32.totalorder %s4278_s6, %s4782_s7  ;;  %p4788_p12 = scmp.lt.s32.totalorder %s4782_s7, %s4782_s7 }
  0x28   :  { %p4789_p13 = por %p4788_p12, %p4787_p11 }
  0x2a   :  { %p4790_p0 = pnand %p4789_p13, %p4783_p10 }
  0xe3   :  { %v122_v14 = vpop.f32.mrf.mxu0  ;;  %v165_v24 = vpop.f32.mrf.mxu1 }
  0xe4   :  { %v4880_v18 = vadd.f32 %v122_v14, %v56_v16  ;;  %v4939_v27 = vadd.f32 %v165_v24, %v64_v25 }
  0xe5   :  { %v124_v15 = vpop.f32.mrf.mxu0  ;;  %v4461_v26 = vpop.f32.mrf.mxu1 }
  0xe6   :  { %v4874_v17 = vadd.f32 %v124_v15, %v60_v13 }
  0xe7   :  { %v126_v19 = vpop.f32.mrf.mxu0  ;;  %v168_v28 = vpop.f32.mrf.mxu1 }
  0xe8   :  { %774 = vrot.lane.b32.xlu1 %v4874_v17, %s4817_s26  ;;  %762 = vrot.lane.b32.xlu0 %v4874_v17, %s4818_s27  ;;  %v4912_v22 = vadd.f32 %v126_v19, %v56_v16  ;;  %v4953_v30 = vadd.f32 %v168_v28, %v64_v25 }
  0xe9   :  { %v128_v20 = vpop.f32.mrf.mxu0  ;;  %v4462_v29 = vpop.f32.mrf.mxu1 }
  0xea   :  { %v4906_v21 = vadd.f32 %v128_v20, %v60_v13 }
  0xec   :  { %768 = vrot.lane.b32.xlu0 %v4874_v17, %s4819_s28  ;;  %174 = vrot.lane.b32.xlu1 %v4880_v18, %s4818_s27 }
  0xf0   :  { %180 = vrot.lane.b32.xlu0 %v4880_v18, %s4819_s28  ;;  %186 = vrot.lane.b32.xlu1 %v4880_v18, %s4817_s26 }
  0xf4   :  { %780 = vrot.lane.b32.xlu0 %v4874_v17, %s4820_s2  ;;  %786 = vrot.lane.b32.xlu1 %v4874_v17, %s4821_s29 }
  0xf8   :  { %792 = vrot.lane.b32.xlu0 %v4874_v17, %s4822_s30  ;;  %798 = vrot.lane.b32.xlu1 %v4874_v17, %s4823_s4 }
  0xfc   :  { %192 = vrot.lane.b32.xlu0 %v4880_v18, %s4820_s2  ;;  %198 = vrot.lane.b32.xlu1 %v4880_v18, %s4821_s29 }
 0x100   :  { %204 = vrot.lane.b32.xlu0 %v4880_v18, %s4822_s30  ;;  %210 = vrot.lane.b32.xlu1 %v4880_v18, %s4823_s4 }
 0x104   :  { %764 = vrot.lane.b32.xlu0 %v4906_v21, %s4818_s27  ;;  %770 = vrot.lane.b32.xlu1 %v4906_v21, %s4819_s28 }
 0x108   :  { %776 = vrot.lane.b32.xlu0 %v4906_v21, %s4817_s26  ;;  %176 = vrot.lane.b32.xlu1 %v4912_v22, %s4818_s27 }
 0x10c   :  { %182 = vrot.lane.b32.xlu0 %v4912_v22, %s4819_s28  ;;  %188 = vrot.lane.b32.xlu1 %v4912_v22, %s4817_s26 }
 0x110   :  { %782 = vrot.lane.b32.xlu0 %v4906_v21, %s4820_s2  ;;  %788 = vrot.lane.b32.xlu1 %v4906_v21, %s4821_s29 }
 0x114   :  { %794 = vrot.lane.b32.xlu0 %v4906_v21, %s4822_s30  ;;  %800 = vrot.lane.b32.xlu1 %v4906_v21, %s4823_s4 }
 0x118   :  { %194 = vrot.lane.b32.xlu0 %v4912_v22, %s4820_s2  ;;  %200 = vrot.lane.b32.xlu1 %v4912_v22, %s4821_s29 }
 0x11c   :  { %206 = vrot.lane.b32.xlu0 %v4912_v22, %s4822_s30  ;;  %212 = vrot.lane.b32.xlu1 %v4912_v22, %s4823_s4 }
 0x120   :  { %1350 = vrot.lane.b32.xlu0 %v4939_v27, %s4818_s27  ;;  %1356 = vrot.lane.b32.xlu1 %v4939_v27, %s4819_s28 }
 0x124   :  { %1362 = vrot.lane.b32.xlu0 %v4939_v27, %s4817_s26  ;;  %1374 = vrot.lane.b32.xlu1 %v4939_v27, %s4821_s29 }
 0x128   :  { %1368 = vrot.lane.b32.xlu0 %v4939_v27, %s4820_s2  ;;  %1380 = vrot.lane.b32.xlu1 %v4939_v27, %s4822_s30 }
 0x12c   :  { %1386 = vrot.lane.b32.xlu0 %v4939_v27, %s4823_s4  ;;  %1358 = vrot.lane.b32.xlu1 %v4953_v30, %s4819_s28 }
 0x130   :  { %1352 = vrot.lane.b32.xlu0 %v4953_v30, %s4818_s27  ;;  %1364 = vrot.lane.b32.xlu1 %v4953_v30, %s4817_s26 }
 0x134   :  { %1370 = vrot.lane.b32.xlu1 %v4953_v30, %s4820_s2 }
 0x15a   :  { %v775_v36 = vpop.permute.xlu1 %774  ;;  %v763_v37 = vpop.permute.xlu0 %762 }
 0x15b   :  { %v820_v40 = vcombine.low %v763_v37, %v775_v36  ;;  %v821_v41 = vcombine.high %v763_v37, %v775_v36 }
 0x15d   :  { %v828_v47 = vrot.slane %v820_v40, %v4966_v39  ;;  %v835_v48 = vrot.slane %v821_v41, %v4966_v39 }
 0x15e   :  { %v769_v42 = vpop.permute.xlu0 %768  ;;  %v175_v43 = vpop.permute.xlu1 %174 }
 0x15f   :  { %v804_v44 = vcombine.low %v4874_v17, %v769_v42  ;;  %v805_v45 = vcombine.high %v4874_v17, %v769_v42 }
 0x161   :  { %v812_v49 = vrot.slane %v804_v44, %v4966_v39  ;;  %v819_v50 = vrot.slane %v805_v45, %v4966_v39 }
 0x162   :  { %v181_v51 = vpop.permute.xlu0 %180  ;;  %v187_v52 = vpop.permute.xlu1 %186 }
 0x163   :  { %v868_v53 = vcombine.low %v812_v49, %v828_v47  ;;  %v869_v54 = vcombine.high %v812_v49, %v828_v47  ;;  %v884_v55 = vcombine.low %v819_v50, %v835_v48  ;;  %v885_v56 = vcombine.high %v819_v50, %v835_v48 }
 0x164   :  { %v216_v57 = vcombine.low %v4880_v18, %v181_v51  ;;  %v217_v58 = vcombine.high %v4880_v18, %v181_v51  ;;  %v232_v59 = vcombine.low %v175_v43, %v187_v52  ;;  %v233_v60 = vcombine.high %v175_v43, %v187_v52 }
 0x165   :  { %v876_v61 = vrot.slane %v868_v53, %v4971_v46  ;;  %v883_v62 = vrot.slane %v869_v54, %v4971_v46  ;;  %v892_v63 = vrot.slane %v884_v55, %v4971_v46  ;;  %v899_v0 = vrot.slane %v885_v56, %v4971_v46 }
 0x166   :  { %v224_v2 = vrot.slane %v216_v57, %v4966_v39  ;;  %v231_v3 = vrot.slane %v217_v58, %v4966_v39  ;;  %v240_v4 = vrot.slane %v232_v59, %v4966_v39  ;;  %v247_v5 = vrot.slane %v233_v60, %v4966_v39  ;;  %v781_v6 = vpop.permute.xlu0 %780  ;;  %v787_v7 = vpop.permute.xlu1 %786 }
 0x167   :  { %v4311_v8 = vcombine.low %v876_v61, %v883_v62  ;;  %v4313_v9 = vcombine.high %v876_v61, %v883_v62  ;;  %v4315_v10 = vcombine.low %v892_v63, %v899_v0  ;;  %v4317_v11 = vcombine.high %v892_v63, %v899_v0 }
 0x168   :  { %v280_v12 = vcombine.low %v224_v2, %v240_v4  ;;  %v281_v13 = vcombine.high %v224_v2, %v240_v4  ;;  %v296_v14 = vcombine.low %v231_v3, %v247_v5  ;;  %v297_v15 = vcombine.high %v231_v3, %v247_v5 }
 0x169   :  { %v4988_v16 = vrot.slane %v4311_v8, %v4966_v39  ;;  %v4991_v17 = vrot.slane %v4313_v9, %v4966_v39  ;;  %v4994_v18 = vrot.slane %v4315_v10, %v4966_v39  ;;  %v4997_v19 = vrot.slane %v4317_v11, %v4966_v39 }
 0x16a   :  { %v288_v20 = vrot.slane %v280_v12, %v4971_v46  ;;  %v295_v23 = vrot.slane %v281_v13, %v4971_v46  ;;  %v304_v24 = vrot.slane %v296_v14, %v4971_v46  ;;  %v311_v25 = vrot.slane %v297_v15, %v4971_v46  ;;  %v793_v26 = vpop.permute.xlu0 %792  ;;  %v799_v28 = vpop.permute.xlu1 %798 }
 0x16b   :  { %v836_v29 = vcombine.low %v781_v6, %v793_v26  ;;  %v837_v31 = vcombine.high %v781_v6, %v793_v26  ;;  %v852_v32 = vcombine.low %v787_v7, %v799_v28  ;;  %v853_v33 = vcombine.high %v787_v7, %v799_v28 }
 0x16c   :  { %v4295_v34 = vcombine.low %v288_v20, %v295_v23  ;;  %v4297_v35 = vcombine.high %v288_v20, %v295_v23  ;;  %v4299_v36 = vcombine.low %v304_v24, %v311_v25  ;;  %v4301_v37 = vcombine.high %v304_v24, %v311_v25 }
 0x16d   :  { %v844_v38 = vrot.slane %v836_v29, %v4966_v39  ;;  %v851_v40 = vrot.slane %v837_v31, %v4966_v39  ;;  %v860_v41 = vrot.slane %v852_v32, %v4966_v39  ;;  %v867_v42 = vrot.slane %v853_v33, %v4966_v39 }
 0x16e   :  { %v5008_v43 = vrot.slane %v4295_v34, %v4966_v39  ;;  %v5011_v44 = vrot.slane %v4297_v35, %v4966_v39  ;;  %v5014_v45 = vrot.slane %v4299_v36, %v4966_v39  ;;  %v5017_v47 = vrot.slane %v4301_v37, %v4966_v39  ;;  %v193_v48 = vpop.permute.xlu0 %192  ;;  %v199_v49 = vpop.permute.xlu1 %198 }
 0x16f   :  { %v900_v50 = vcombine.low %v844_v38, %v860_v41  ;;  %v901_v51 = vcombine.high %v844_v38, %v860_v41  ;;  %v916_v52 = vcombine.low %v851_v40, %v867_v42  ;;  %v917_v53 = vcombine.high %v851_v40, %v867_v42 }
 0x170   :  { %v552_v54 = vcombine.low %v5008_v43, %v5011_v44  ;;  %v584_v55 = vcombine.low %v5014_v45, %v5017_v47  ;;  %v553_v58 = vcombine.high %v5008_v43, %v5011_v44  ;;  %v1140_v63 = vcombine.low %v4988_v16, %v4991_v17 }
 0x171   :  { %v5024_v56 = vrot.slane %v900_v50, %v4971_v46  ;;  %v5027_v57 = vrot.slane %v901_v51, %v4971_v46  ;;  %v5032_v61 = vrot.slane %v916_v52, %v4971_v46  ;;  %v5035_v62 = vrot.slane %v917_v53, %v4971_v46 }
 0x172   :  { %v205_v59 = vpop.permute.xlu0 %204  ;;  %v211_v60 = vpop.permute.xlu1 %210  ;;  %v1172_v0 = vcombine.low %v4994_v18, %v4997_v19  ;;  %v560_v8 = vrot.slane %v552_v54, %v4971_v46  ;;  %v592_v9 = vrot.slane %v584_v55, %v4971_v46  ;;  %v1148_v23 = vrot.slane %v1140_v63, %v4971_v46 }
 0x173   :  { %v248_v2 = vcombine.low %v193_v48, %v205_v59  ;;  %v249_v3 = vcombine.high %v193_v48, %v205_v59  ;;  %v264_v4 = vcombine.low %v199_v49, %v211_v60  ;;  %v265_v5 = vcombine.high %v199_v49, %v211_v60 }
 0x174   :  { %v4312_v6 = vcombine.low %v5024_v56, %v5027_v57  ;;  %v4314_v7 = vcombine.high %v5024_v56, %v5027_v57  ;;  %v4316_v20 = vcombine.low %v5032_v61, %v5035_v62  ;;  %v1180_v24 = vrot.slane %v1172_v0, %v4971_v46 }
 0x175   :  { %v256_v10 = vrot.slane %v248_v2, %v4966_v39  ;;  %v263_v11 = vrot.slane %v249_v3, %v4966_v39  ;;  %v272_v12 = vrot.slane %v264_v4, %v4966_v39  ;;  %v279_v13 = vrot.slane %v265_v5, %v4966_v39 }
 0x176   :  { %v765_v14 = vpop.permute.xlu0 %764  ;;  %v771_v15 = vpop.permute.xlu1 %770  ;;  %v1204_v32 = vcombine.low %v1148_v23, %v1180_v24  ;;  %v1205_v33 = vcombine.high %v1148_v23, %v1180_v24  ;;  %v4318_v59 = vcombine.high %v5032_v61, %v5035_v62  ;;  %v585_v61 = vcombine.high %v5014_v45, %v5017_v47 }
 0x177   :  { %v940_v25 = vcombine.low %v4906_v21, %v771_v15  ;;  %v312_v26 = vcombine.low %v256_v10, %v272_v12  ;;  %v313_v28 = vcombine.high %v256_v10, %v272_v12  ;;  %v328_v29 = vcombine.low %v263_v11, %v279_v13 }
 0x178   :  { %v329_v31 = vcombine.high %v263_v11, %v279_v13  ;;  %v941_v34 = vcombine.high %v4906_v21, %v771_v15  ;;  %v1952_v42 = vpack.c.bf16 %v1204_v32, %v1204_v32  ;;  %v1953_v48 = vpack.c.bf16 %v1205_v33, %v1205_v33 }
 0x179   :  { %v948_v35 = vrot.slane %v940_v25, %v4966_v39  ;;  %v320_v36 = vrot.slane %v312_v26, %v4971_v46  ;;  %v327_v37 = vrot.slane %v313_v28, %v4971_v46  ;;  %v336_v38 = vrot.slane %v328_v29, %v4971_v46 }
 0x17a   :  { %v343_v40 = vrot.slane %v329_v31, %v4971_v46  ;;  %v777_v41 = vpop.permute.xlu0 %776  ;;  %v1972_v21 = vsel %vm84_vm1, %v1952_v42, 0  ;;  %v2018_v55 = vsel %vm84_vm1, %v1953_v48, 0  ;;  %v955_v0 = vrot.slane %v941_v34, %v4966_v39  ;;  %v177_v2 = vpop.permute.xlu1 %176 }
 0x17b   :  { %v956_v49 = vcombine.low %v765_v14, %v777_v41  ;;  %v957_v50 = vcombine.high %v765_v14, %v777_v41  ;;  %v4296_v51 = vcombine.low %v320_v36, %v327_v37  ;;  %v4298_v52 = vcombine.high %v320_v36, %v327_v37  ;;  %4464 = vmatpush3.bf16.xpose.msra.mxu0 %v1972_v21 }
 0x17c   :  { %v4300_v53 = vcombine.low %v336_v38, %v343_v40  ;;  %v4302_v54 = vcombine.high %v336_v38, %v343_v40  ;;  %4470 = vmatpush3.bf16.xpose.msra.mxu1 %v2018_v55  ;;  %v5084_v62 = vrot.slane %v4312_v6, %v4966_v39  ;;  %v5087_v11 = vrot.slane %v4314_v7, %v4966_v39 }
 0x17d   :  { %v964_v56 = vrot.slane %v956_v49, %v4966_v39  ;;  %v971_v57 = vrot.slane %v957_v50, %v4966_v39  ;;  %v5069_v60 = vrot.slane %v4296_v51, %v4966_v39  ;;  %v5072_v63 = vrot.slane %v4298_v52, %v4966_v39  ;;  %4475 = vmatprep.subr.bf16.mxu0 %v4815_v1 }
 0x17e   :  { %v5076_v3 = vrot.slane %v4300_v53, %v4966_v39  ;;  %v5079_v4 = vrot.slane %v4302_v54, %v4966_v39  ;;  %v5090_v12 = vrot.slane %v4316_v20, %v4966_v39  ;;  %v183_v13 = vpop.permute.xlu0 %182  ;;  %4481 = vmatprep.subr.bf16.mxu1 %v4815_v1  ;;  %v616_v47 = vcombine.low %v560_v8, %v592_v9 }
 0x17f   :  { %v1004_v5 = vcombine.low %v948_v35, %v964_v56  ;;  %v1005_v10 = vcombine.high %v948_v35, %v964_v56  ;;  %v1020_v23 = vcombine.low %v955_v0, %v971_v57  ;;  %v1021_v45 = vcombine.high %v955_v0, %v971_v57 }
 0x180   :  { %v617_v6 = vcombine.high %v560_v8, %v592_v9  ;;  %v1141_v7 = vcombine.high %v4988_v16, %v4991_v17  ;;  %v1173_v20 = vcombine.high %v4994_v18, %v4997_v19  ;;  %v5105_v24 = vrot.slane %v4318_v59, %v4966_v39  ;;  %v189_v17 = vpop.permute.xlu1 %188 }
 0x181   :  { %v5094_v14 = vrot.slane %v1004_v5, %v4971_v46  ;;  %v5097_v15 = vrot.slane %v1005_v10, %v4971_v46  ;;  %v568_v25 = vcombine.low %v5069_v60, %v5072_v63  ;;  %v569_v26 = vcombine.high %v5069_v60, %v5072_v63 }
 0x182   :  { %v600_v28 = vcombine.low %v5076_v3, %v5079_v4  ;;  %v1936_v29 = vpack.c.bf16 %v616_v47, %v616_v47  ;;  %v1937_v8 = vpack.c.bf16 %v617_v6, %v617_v6  ;;  %v1155_v9 = vrot.slane %v1141_v7, %v4971_v46  ;;  %v5128_v36 = vpop.permute.xlu0 %782 }
 0x183   :  { %v1187_v16 = vrot.slane %v1173_v20, %v4971_v46  ;;  %v5116_v18 = vrot.slane %v1020_v23, %v4971_v46  ;;  %v5119_v19 = vrot.slane %v1021_v45, %v4971_v46  ;;  %v4319_v31 = vcombine.low %v5094_v14, %v5097_v15 }
 0x184   :  { %v4321_v32 = vcombine.high %v5094_v14, %v5097_v15  ;;  %4466 = vmatmul.mubr.msk.bf16.vlgmr.msra.gmra.mxu0 %vm84_vm1, %v1936_v29  ;;  %4472 = vmatmul.mubr.msk.bf16.vlgmr.msra.gmra.mxu1 %vm84_vm1, %v1937_v8  ;;  %v352_v35 = vcombine.low %v4912_v22, %v183_v13  ;;  %v353_v37 = vcombine.high %v4912_v22, %v183_v13  ;;  %v789_v21 = vpop.permute.xlu1 %788 }
 0x185   :  { %v1206_v33 = vcombine.low %v1155_v9, %v1187_v16  ;;  %v1207_v34 = vcombine.high %v1155_v9, %v1187_v16  ;;  %v368_v38 = vcombine.low %v177_v2, %v189_v17  ;;  %v369_v40 = vcombine.high %v177_v2, %v189_v17  ;;  %4477 = vmatprep.mubr.msk.bf16.mxu0 %vm4816_vm0, %v4815_v1 }
 0x186   :  { %4483 = vmatprep.mubr.msk.bf16.mxu1 %vm4816_vm0, %v4815_v1  ;;  %v360_v48 = vrot.slane %v352_v35, %v4966_v39  ;;  %v567_v49 = vrot.slane %v553_v58, %v4971_v46  ;;  %v367_v50 = vrot.slane %v353_v37, %v4966_v39  ;;  %v599_v52 = vrot.slane %v585_v61, %v4971_v46  ;;  %v795_v2 = vpop.permute.xlu0 %794 }
 0x187   :  { %v1954_v41 = vpack.c.bf16 %v1206_v33, %v1206_v33  ;;  %v1955_v42 = vpack.c.bf16 %v1207_v34, %v1207_v34  ;;  %v376_v22 = vrot.slane %v368_v38, %v4966_v39  ;;  %v383_v51 = vrot.slane %v369_v40, %v4966_v39 }
 0x188   :  { %v1156_v55 = vcombine.low %v5084_v62, %v5087_v11  ;;  %v1188_v43 = vcombine.low %v5090_v12, %v5105_v24  ;;  %v618_v59 = vcombine.low %v567_v49, %v599_v52  ;;  %v619_v0 = vcombine.high %v567_v49, %v599_v52  ;;  %v801_v17 = vpop.permute.xlu1 %800 }
 0x189   :  { %v2064_v53 = vsel %vm84_vm1, %v1954_v41, 0  ;;  %v2110_v54 = vsel %vm84_vm1, %v1955_v42, 0  ;;  %v416_v44 = vcombine.low %v360_v48, %v376_v22  ;;  %v417_v58 = vcombine.high %v360_v48, %v376_v22 }
 0x18a   :  { %4476 = vmatpush3.bf16.xpose.msra.mxu0 %v2064_v53  ;;  %4482 = vmatpush3.bf16.xpose.msra.mxu1 %v2110_v54  ;;  %v432_v56 = vcombine.low %v367_v50, %v383_v51  ;;  %v433_v57 = vcombine.high %v367_v50, %v383_v51  ;;  %v1164_v13 = vrot.slane %v1156_v55, %v4971_v46 }
 0x18b   :  { %4487 = vmatprep.subr.bf16.mxu0 %v4815_v1  ;;  %4493 = vmatprep.subr.bf16.mxu1 %v4815_v1  ;;  %v424_v5 = vrot.slane %v416_v44, %v4971_v46  ;;  %v431_v10 = vrot.slane %v417_v58, %v4971_v46  ;;  %v601_v14 = vcombine.high %v5076_v3, %v5079_v4 }
 0x18c   :  { %v440_v61 = vrot.slane %v432_v56, %v4971_v46  ;;  %v447_v15 = vrot.slane %v433_v57, %v4971_v46  ;;  %v1938_v23 = vpack.c.bf16 %v618_v59, %v618_v59  ;;  %v1196_v45 = vrot.slane %v1188_v43, %v4971_v46 }
 0x18d   :  { %v4303_v47 = vcombine.low %v424_v5, %v431_v10  ;;  %v4305_v6 = vcombine.high %v424_v5, %v431_v10  ;;  %v1939_v7 = vpack.c.bf16 %v619_v0, %v619_v0  ;;  %v972_v20 = vcombine.low %v5128_v36, %v795_v2 }
 0x18e   :  { %v4307_v29 = vcombine.low %v440_v61, %v447_v15  ;;  %v1208_v8 = vcombine.low %v1164_v13, %v1196_v45  ;;  %v1209_v9 = vcombine.high %v1164_v13, %v1196_v45  ;;  %v973_v16 = vcombine.high %v5128_v36, %v795_v2 }
 0x18f   :  { %v5163_v33 = vrot.slane %v4319_v31, %v4966_v39  ;;  %v5166_v34 = vrot.slane %v4321_v32, %v4966_v39  ;;  %v4323_v35 = vcombine.low %v5116_v18, %v5119_v19  ;;  %v4325_v37 = vcombine.high %v5116_v18, %v5119_v19  ;;  %v195_v31 = vpop.permute.xlu0 %194 }
 0x190   :  { %v5173_v38 = vrot.slane %v4303_v47, %v4966_v39  ;;  %v4309_v40 = vcombine.high %v440_v61, %v447_v15  ;;  %v1956_v36 = vpack.c.bf16 %v1208_v8, %v1208_v8  ;;  %v5178_v41 = vrot.slane %v4305_v6, %v4966_v39 }
 0x191   :  { %4478 = vmatmul.mubr.msk.bf16.vlgmr.msra.gmra.mxu0 %vm84_vm1, %v1938_v23  ;;  %4484 = vmatmul.mubr.msk.bf16.vlgmr.msra.gmra.mxu1 %vm84_vm1, %v1939_v7  ;;  %v1957_v32 = vpack.c.bf16 %v1209_v9, %v1209_v9  ;;  %v980_v42 = vrot.slane %v972_v20, %v4966_v39  ;;  %v988_v48 = vcombine.low %v789_v21, %v801_v17 }
 0x192   :  { %4489 = vmatprep.mubr.msk.bf16.mxu0 %vm4816_vm0, %v4815_v1  ;;  %v5184_v18 = vrot.slane %v4307_v29, %v4966_v39  ;;  %v2156_v19 = vsel %vm84_vm1, %v1956_v36, 0  ;;  %v987_v49 = vrot.slane %v973_v16, %v4966_v39  ;;  %v989_v50 = vcombine.high %v789_v21, %v801_v17  ;;  %4495 = vmatprep.mubr.msk.bf16.mxu1 %vm4816_vm0, %v4815_v1  ;;  %v201_v21 = vpop.permute.xlu1 %200 }
 0x193   :  { %4488 = vmatpush3.bf16.xpose.msra.mxu0 %v2156_v19  ;;  %v2202_v22 = vsel %vm84_vm1, %v1957_v32, 0  ;;  %v996_v51 = vrot.slane %v988_v48, %v4966_v39  ;;  %v576_v52 = vrot.slane %v568_v25, %v4971_v46  ;;  %v608_v53 = vrot.slane %v600_v28, %v4971_v46  ;;  %v207_v2 = vpop.permute.xlu0 %206 }
 0x194   :  { %4494 = vmatpush3.bf16.xpose.msra.mxu1 %v2202_v22  ;;  %v1003_v54 = vrot.slane %v989_v50, %v4966_v39  ;;  %4499 = vmatprep.subr.bf16.mxu0 %v4815_v1  ;;  %v1157_v55 = vcombine.high %v5084_v62, %v5087_v11  ;;  %v1189_v43 = vcombine.high %v5090_v12, %v5105_v24 }
 0x195   :  { %v1036_v44 = vcombine.low %v980_v42, %v996_v51  ;;  %v1037_v58 = vcombine.high %v980_v42, %v996_v51  ;;  %v620_v25 = vcombine.low %v576_v52, %v608_v53  ;;  %v621_v56 = vcombine.high %v576_v52, %v608_v53  ;;  %4505 = vmatprep.subr.bf16.mxu1 %v4815_v1 }
 0x196   :  { %v1052_v57 = vcombine.low %v987_v49, %v1003_v54  ;;  %v1053_v28 = vcombine.high %v987_v49, %v1003_v54  ;;  %v1171_v59 = vrot.slane %v1157_v55, %v4971_v46  ;;  %v1203_v0 = vrot.slane %v1189_v43, %v4971_v46  ;;  %v213_v8 = vpop.permute.xlu1 %212 }
 0x197   :  { %v5210_v5 = vrot.slane %v4309_v40, %v4966_v39  ;;  %v5213_v62 = vrot.slane %v1036_v44, %v4971_v46  ;;  %v5216_v11 = vrot.slane %v1037_v58, %v4971_v46  ;;  %v1940_v12 = vpack.c.bf16 %v620_v25, %v620_v25 }
 0x198   :  { %v5219_v24 = vrot.slane %v1052_v57, %v4971_v46  ;;  %v5222_v10 = vrot.slane %v1053_v28, %v4971_v46  ;;  %v1210_v61 = vcombine.low %v1171_v59, %v1203_v0  ;;  %v1211_v13 = vcombine.high %v1171_v59, %v1203_v0 }
 0x199   :  { %v5225_v15 = vrot.slane %v4323_v35, %v4966_v39  ;;  %v1941_v23 = vpack.c.bf16 %v621_v56, %v621_v56  ;;  %v384_v45 = vcombine.low %v195_v31, %v207_v2  ;;  %v385_v47 = vcombine.high %v195_v31, %v207_v2 }
 0x19a   :  { %v5228_v6 = vrot.slane %v4325_v37, %v4966_v39  ;;  %v688_v7 = vcombine.low %v5173_v38, %v5178_v41  ;;  %4490 = vmatmul.mubr.msk.bf16.vlgmr.msra.gmra.mxu0 %vm84_vm1, %v1940_v12  ;;  %v1958_v20 = vpack.c.bf16 %v1210_v61, %v1210_v61  ;;  %v1959_v29 = vpack.c.bf16 %v1211_v13, %v1211_v13 }
 0x19b   :  { %v720_v9 = vcombine.low %v5184_v18, %v5210_v5  ;;  %v4320_v16 = vcombine.low %v5213_v62, %v5216_v11  ;;  %v4322_v17 = vcombine.high %v5213_v62, %v5216_v11  ;;  %v4324_v35 = vcombine.low %v5219_v24, %v5222_v10  ;;  %4496 = vmatmul.mubr.msk.bf16.vlgmr.msra.gmra.mxu1 %vm84_vm1, %v1941_v23 }
 0x19c   :  { %v2248_v37 = vsel %vm84_vm1, %v1958_v20, 0  ;;  %v2294_v40 = vsel %vm84_vm1, %v1959_v29, 0  ;;  %v392_v36 = vrot.slane %v384_v45, %v4966_v39  ;;  %v399_v31 = vrot.slane %v385_v47, %v4966_v39  ;;  %4501 = vmatprep.mubr.msk.bf16.mxu0 %vm4816_vm0, %v4815_v1  ;;  %4507 = vmatprep.mubr.msk.bf16.mxu1 %vm4816_vm0, %v4815_v1 }
 0x19d   :  { %4500 = vmatpush3.bf16.xpose.msra.mxu0 %v2248_v37  ;;  %4506 = vmatpush3.bf16.xpose.msra.mxu1 %v2294_v40  ;;  %v400_v32 = vcombine.low %v201_v21, %v213_v8  ;;  %v401_v42 = vcombine.high %v201_v21, %v213_v8  ;;  %v583_v48 = vrot.slane %v569_v26, %v4971_v46 }
 0x19e   :  { %v615_v19 = vrot.slane %v601_v14, %v4971_v46  ;;  %4511 = vmatprep.subr.bf16.mxu0 %v4815_v1  ;;  %4517 = vmatprep.subr.bf16.mxu1 %v4815_v1  ;;  %v1276_v49 = vcombine.low %v5163_v33, %v5166_v34  ;;  %v1308_v50 = vcombine.low %v5225_v15, %v5228_v6 }
 0x19f   :  { %v4326_v22 = vcombine.high %v5219_v24, %v5222_v10  ;;  %v408_v60 = vrot.slane %v400_v32, %v4966_v39  ;;  %v415_v63 = vrot.slane %v401_v42, %v4966_v39  ;;  %v696_v3 = vrot.slane %v688_v7, %v4971_v46  ;;  %v1351_v32 = vpop.permute.xlu0 %1350 }
 0x1a0   :  { %v622_v4 = vcombine.low %v583_v48, %v615_v19  ;;  %v623_v26 = vcombine.high %v583_v48, %v615_v19  ;;  %v1284_v14 = vrot.slane %v1276_v49, %v4971_v46  ;;  %v1316_v51 = vrot.slane %v1308_v50, %v4971_v46 }
 0x1a1   :  { %v448_v52 = vcombine.low %v392_v36, %v408_v60  ;;  %v449_v53 = vcombine.high %v392_v36, %v408_v60  ;;  %v464_v54 = vcombine.low %v399_v31, %v415_v63  ;;  %v465_v21 = vcombine.high %v399_v31, %v415_v63 }
 0x1a2   :  { %v1942_v55 = vpack.c.bf16 %v622_v4, %v622_v4  ;;  %v1943_v43 = vpack.c.bf16 %v623_v26, %v623_v26  ;;  %v1340_v44 = vcombine.low %v1284_v14, %v1316_v51  ;;  %v1341_v58 = vcombine.high %v1284_v14, %v1316_v51 }
 0x1a3   :  { %v456_v25 = vrot.slane %v448_v52, %v4971_v46  ;;  %v463_v56 = vrot.slane %v449_v53, %v4971_v46  ;;  %v472_v57 = vrot.slane %v464_v54, %v4971_v46  ;;  %v728_v28 = vrot.slane %v720_v9, %v4971_v46  ;;  %v1357_v53 = vpop.permute.xlu1 %1356 }
 0x1a4   :  { %v479_v59 = vrot.slane %v465_v21, %v4971_v46  ;;  %4502 = vmatmul.mubr.msk.bf16.vlgmr.msra.gmra.mxu0 %vm84_vm1, %v1942_v55  ;;  %4508 = vmatmul.mubr.msk.bf16.vlgmr.msra.gmra.mxu1 %vm84_vm1, %v1943_v43  ;;  %v1960_v0 = vpack.c.bf16 %v1340_v44, %v1340_v44  ;;  %v1961_v2 = vpack.c.bf16 %v1341_v58, %v1341_v58  ;;  %v1363_v44 = vpop.permute.xlu0 %1362 }
 0x1a5   :  { %v1227_v62 = vrot.slane %v4320_v16, %v4966_v39  ;;  %4513 = vmatprep.mubr.msk.bf16.mxu0 %vm4816_vm0, %v4815_v1  ;;  %v1243_v11 = vrot.slane %v4322_v17, %v4966_v39  ;;  %v1259_v12 = vrot.slane %v4324_v35, %v4966_v39  ;;  %v1275_v24 = vrot.slane %v4326_v22, %v4966_v39 }
 0x1a6   :  { %v2340_v10 = vsel %vm84_vm1, %v1960_v0, 0  ;;  %4519 = vmatprep.mubr.msk.bf16.mxu1 %vm4816_vm0, %v4815_v1  ;;  %v4304_v61 = vcombine.low %v456_v25, %v463_v56  ;;  %v4306_v13 = vcombine.high %v456_v25, %v463_v56  ;;  %v2386_v23 = vsel %vm84_vm1, %v1961_v2, 0 }
 0x1a7   :  { %4512 = vmatpush3.bf16.xpose.msra.mxu0 %v2340_v10  ;;  %v752_v45 = vcombine.low %v696_v3, %v728_v28  ;;  %v4308_v47 = vcombine.low %v472_v57, %v479_v59  ;;  %4518 = vmatpush3.bf16.xpose.msra.mxu1 %v2386_v23  ;;  %v1277_v7 = vcombine.high %v5163_v33, %v5166_v34 }
 0x1a8   :  { %4523 = vmatprep.subr.bf16.mxu0 %v4815_v1  ;;  %v1309_v20 = vcombine.high %v5225_v15, %v5228_v6  ;;  %v4310_v29 = vcombine.high %v472_v57, %v479_v59  ;;  %v753_v8 = vcombine.high %v696_v3, %v728_v28  ;;  %4529 = vmatprep.subr.bf16.mxu1 %v4815_v1 }
 0x1a9   :  { %v689_v9 = vcombine.high %v5173_v38, %v5178_v41  ;;  %v721_v16 = vcombine.high %v5184_v18, %v5210_v5  ;;  %v1291_v17 = vrot.slane %v1277_v7, %v4971_v46  ;;  %v5301_v37 = vrot.slane %v4304_v61, %v4966_v39 }
 0x1aa   :  { %v1323_v35 = vrot.slane %v1309_v20, %v4971_v46  ;;  %v1944_v33 = vpack.c.bf16 %v752_v45, %v752_v45  ;;  %v1292_v34 = vcombine.low %v1227_v62, %v1243_v11  ;;  %v1324_v15 = vcombine.low %v1259_v12, %v1275_v24 }
 0x1ab   :  { %v5304_v6 = vrot.slane %v4306_v13, %v4966_v39  ;;  %v5307_v40 = vrot.slane %v4308_v47, %v4966_v39  ;;  %v5310_v18 = vrot.slane %v4310_v29, %v4966_v39  ;;  %v1945_v5 = vpack.c.bf16 %v753_v8, %v753_v8 }
 0x1ac   :  { %v1342_v38 = vcombine.low %v1291_v17, %v1323_v35  ;;  %v1343_v41 = vcombine.high %v1291_v17, %v1323_v35  ;;  %v1300_v36 = vrot.slane %v1292_v34, %v4971_v46  ;;  %v1332_v31 = vrot.slane %v1324_v15, %v4971_v46 }
 0x1ad   :  { %v703_v19 = vrot.slane %v689_v9, %v4971_v46  ;;  %v735_v49 = vrot.slane %v721_v16, %v4971_v46  ;;  %v1293_v3 = vcombine.high %v1227_v62, %v1243_v11  ;;  %v704_v4 = vcombine.low %v5301_v37, %v5304_v6 }
 0x1ae   :  { %4514 = vmatmul.mubr.msk.bf16.vlgmr.msra.gmra.mxu0 %vm84_vm1, %v1944_v33  ;;  %v1962_v42 = vpack.c.bf16 %v1342_v38, %v1342_v38  ;;  %v1963_v48 = vpack.c.bf16 %v1343_v41, %v1343_v41  ;;  %4520 = vmatmul.mubr.msk.bf16.vlgmr.msra.gmra.mxu1 %vm84_vm1, %v1945_v5  ;;  %v1344_v50 = vcombine.low %v1300_v36, %v1332_v31 }
 0x1af   :  { %4525 = vmatprep.mubr.msk.bf16.mxu0 %vm4816_vm0, %v4815_v1  ;;  %4531 = vmatprep.mubr.msk.bf16.mxu1 %vm4816_vm0, %v4815_v1  ;;  %v1345_v63 = vcombine.high %v1300_v36, %v1332_v31  ;;  %v736_v26 = vcombine.low %v5307_v40, %v5310_v18  ;;  %v1325_v14 = vcombine.high %v1259_v12, %v1275_v24 }
 0x1b0   :  { %v2432_v22 = vsel %vm84_vm1, %v1962_v42, 0  ;;  %v2478_v60 = vsel %vm84_vm1, %v1963_v48, 0  ;;  %v754_v51 = vcombine.low %v703_v19, %v735_v49  ;;  %v755_v52 = vcombine.high %v703_v19, %v735_v49 }
 0x1b1   :  { %4524 = vmatpush3.bf16.xpose.msra.mxu0 %v2432_v22  ;;  %4530 = vmatpush3.bf16.xpose.msra.mxu1 %v2478_v60  ;;  %v1964_v54 = vpack.c.bf16 %v1344_v50, %v1344_v50  ;;  %v1307_v21 = vrot.slane %v1293_v3, %v4971_v46  ;;  %v1339_v55 = vrot.slane %v1325_v14, %v4971_v46 }
 0x1b2   :  { %4535 = vmatprep.subr.bf16.mxu0 %v4815_v1  ;;  %4541 = vmatprep.subr.bf16.mxu1 %v4815_v1  ;;  %v1392_v43 = vcombine.low %v4939_v27, %v1357_v53  ;;  %v705_v58 = vcombine.high %v5301_v37, %v5304_v6  ;;  %v1965_v25 = vpack.c.bf16 %v1345_v63, %v1345_v63 }
 0x1b3   :  { %v1393_v56 = vcombine.high %v4939_v27, %v1357_v53  ;;  %v1408_v57 = vcombine.low %v1351_v32, %v1363_v44  ;;  %v712_v28 = vrot.slane %v704_v4, %v4971_v46  ;;  %v744_v59 = vrot.slane %v736_v26, %v4971_v46 }
 0x1b4   :  { %v1400_v0 = vrot.slane %v1392_v43, %v4966_v39  ;;  %v1409_v2 = vcombine.high %v1351_v32, %v1363_v44  ;;  %v1946_v62 = vpack.c.bf16 %v754_v51, %v754_v51  ;;  %v1947_v11 = vpack.c.bf16 %v755_v52, %v755_v52 }
 0x1b5   :  { %v1407_v12 = vrot.slane %v1393_v56, %v4966_v39  ;;  %v1416_v24 = vrot.slane %v1408_v57, %v4966_v39  ;;  %v737_v10 = vcombine.high %v5307_v40, %v5310_v18  ;;  %v2524_v61 = vsel %vm84_vm1, %v1964_v54, 0 }
 0x1b6   :  { %v1346_v27 = vcombine.low %v1307_v21, %v1339_v55  ;;  %v1423_v13 = vrot.slane %v1409_v2, %v4966_v39  ;;  %v2570_v23 = vsel %vm84_vm1, %v1965_v25, 0  ;;  %v1347_v45 = vcombine.high %v1307_v21, %v1339_v55 }
 0x1b7   :  { %v1456_v47 = vcombine.low %v1400_v0, %v1416_v24  ;;  %v1457_v7 = vcombine.high %v1400_v0, %v1416_v24  ;;  %v756_v20 = vcombine.low %v712_v28, %v744_v59  ;;  %v757_v9 = vcombine.high %v712_v28, %v744_v59 }
 0x1b8   :  { %4526 = vmatmul.mubr.msk.bf16.vlgmr.msra.gmra.mxu0 %vm84_vm1, %v1946_v62  ;;  %4532 = vmatmul.mubr.msk.bf16.vlgmr.msra.gmra.mxu1 %vm84_vm1, %v1947_v11  ;;  %v1472_v29 = vcombine.low %v1407_v12, %v1423_v13  ;;  %v1473_v8 = vcombine.high %v1407_v12, %v1423_v13  ;;  %v1966_v33 = vpack.c.bf16 %v1346_v27, %v1346_v27 }
 0x1b9   :  { %4536 = vmatpush3.bf16.xpose.msra.mxu0 %v2524_v61  ;;  %4542 = vmatpush3.bf16.xpose.msra.mxu1 %v2570_v23  ;;  %v1464_v16 = vrot.slane %v1456_v47, %v4971_v46  ;;  %v1471_v17 = vrot.slane %v1457_v7, %v4971_v46  ;;  %v1967_v34 = vpack.c.bf16 %v1347_v45, %v1347_v45 }
 0x1ba   :  { %4537 = vmatprep.mubr.msk.bf16.mxu0 %vm4816_vm0, %v4815_v1  ;;  %4543 = vmatprep.mubr.msk.bf16.mxu1 %vm4816_vm0, %v4815_v1  ;;  %v1480_v35 = vrot.slane %v1472_v29, %v4971_v46  ;;  %v1487_v37 = vrot.slane %v1473_v8, %v4971_v46  ;;  %v1948_v41 = vpack.c.bf16 %v756_v20, %v756_v20  ;;  %v2616_v31 = vsel %vm84_vm1, %v1966_v33, 0 }
 0x1bb   :  { %4547 = vmatprep.subr.bf16.mxu0 %v4815_v1  ;;  %4553 = vmatprep.subr.bf16.mxu1 %v4815_v1  ;;  %v4327_v15 = vcombine.low %v1464_v16, %v1471_v17  ;;  %v4329_v6 = vcombine.high %v1464_v16, %v1471_v17  ;;  %v1949_v18 = vpack.c.bf16 %v757_v9, %v757_v9  ;;  %v2662_v32 = vsel %vm84_vm1, %v1967_v34, 0 }
 0x1bc   :  { %v4331_v40 = vcombine.low %v1480_v35, %v1487_v37  ;;  %v4333_v38 = vcombine.high %v1480_v35, %v1487_v37  ;;  %v719_v5 = vrot.slane %v705_v58, %v4971_v46  ;;  %v751_v36 = vrot.slane %v737_v10, %v4971_v46 }
 0x1bd   :  { %v1672_v42 = vrot.slane %v4327_v15, %v4966_v39  ;;  %v1688_v48 = vrot.slane %v4329_v6, %v4966_v39 }
 0x1be   :  { %v1704_v19 = vrot.slane %v4331_v40, %v4966_v39  ;;  %v1720_v49 = vrot.slane %v4333_v38, %v4966_v39  ;;  %v758_v50 = vcombine.low %v719_v5, %v751_v36  ;;  %v759_v22 = vcombine.high %v719_v5, %v751_v36 }
 0x1bf   :  { %v1728_v60 = vcombine.low %v1672_v42, %v1688_v48  ;;  %v1729_v21 = vcombine.high %v1672_v42, %v1688_v48 }
 0x1c0   :  { %4538 = vmatmul.mubr.msk.bf16.vlgmr.msra.gmra.mxu0 %vm84_vm1, %v1948_v41  ;;  %4544 = vmatmul.mubr.msk.bf16.vlgmr.msra.gmra.mxu1 %vm84_vm1, %v1949_v18  ;;  %v1760_v63 = vcombine.low %v1704_v19, %v1720_v49  ;;  %v1950_v3 = vpack.c.bf16 %v758_v50, %v758_v50  ;;  %v1951_v4 = vpack.c.bf16 %v759_v22, %v759_v22 }
 0x1c1   :  { %4548 = vmatpush3.bf16.xpose.msra.mxu0 %v2616_v31  ;;  %4554 = vmatpush3.bf16.xpose.msra.mxu1 %v2662_v32  ;;  %v1736_v26 = vrot.slane %v1728_v60, %v4971_v46  ;;  %v1761_v55 = vcombine.high %v1704_v19, %v1720_v49  ;;  %v1743_v58 = vrot.slane %v1729_v21, %v4971_v46 }
 0x1c2   :  { %4549 = vmatprep.mubr.msk.bf16.mxu0 %vm4816_vm0, %v4815_v1  ;;  %4555 = vmatprep.mubr.msk.bf16.mxu1 %vm4816_vm0, %v4815_v1  ;;  %v1768_v14 = vrot.slane %v1760_v63, %v4971_v46 }
 0x1c3   :  { %4559 = vmatprep.subr.bf16.mxu0 %v4815_v1  ;;  %4565 = vmatprep.subr.bf16.mxu1 %v4815_v1  ;;  %v1775_v25 = vrot.slane %v1761_v55, %v4971_v46 }
 0x1c4   :  { %v1792_v51 = vcombine.low %v1736_v26, %v1768_v14  ;;  %v1793_v52 = vcombine.high %v1736_v26, %v1768_v14 }
 0x1c5   :  { %v5388_v56 = vcombine.low %v1743_v58, %v1775_v25  ;;  %v5390_v57 = vcombine.high %v1743_v58, %v1775_v25 }
 0x1c6   :  { %v2865_v53 = vpack.c.bf16 %v1792_v51, %v1792_v51  ;;  %v2866_v54 = vpack.c.bf16 %v1793_v52, %v1793_v52 }
 0x1c8   :  { %4550 = vmatmul.mubr.msk.bf16.vlgmr.msra.gmra.mxu0 %vm84_vm1, %v1950_v3  ;;  %4556 = vmatmul.mubr.msk.bf16.vlgmr.msra.gmra.mxu1 %vm84_vm1, %v1951_v4  ;;  %v2886_v43 = vsel %vm2884_vm2, %v2865_v53, 0  ;;  %v2932_v44 = vsel %vm2884_vm2, %v2866_v54, 0 }
 0x1c9   :  { %4561 = vmatprep.mubr.msk.bf16.mxu0 %vm4816_vm0, %v4815_v1  ;;  %4567 = vmatprep.mubr.msk.bf16.mxu1 %vm4816_vm0, %v4815_v1 }
 0x1ca   :  { %4560 = vmatpush3.bf16.msra.mxu0 %v2886_v43  ;;  %4566 = vmatpush3.bf16.msra.mxu1 %v2932_v44 }
 0x1cb   :  { %4571 = vmatprep.subr.bf16.mxu0 %v4815_v1  ;;  %4577 = vmatprep.subr.bf16.mxu1 %v4815_v1 }
 0x244   :  { %v5392_v28 = vpop.f32.mrf.mxu0  ;;  %v5394_v59 = vpop.f32.mrf.mxu1 }
 0x245   :  { %v2708_v0 = vsel %vm2704_vm3, %v5394_v59, -inf  ;;  %v2705_v2 = vsel %vm2704_vm3, %v5392_v28, -inf }
 0x246   :  { %2709 = vmax.xlane.f32.xlu1 %v2708_v0  ;;  %v4473_v62 = vpop.f32.mrf.mxu1  ;;  %2706 = vmax.xlane.f32.xlu0 %v2705_v2  ;;  %v4467_v11 = vpop.f32.mrf.mxu0 }
 0x248   :  { %v2011_v12 = vpop.f32.mrf.mxu0  ;;  %v2057_v24 = vpop.f32.mrf.mxu1 }
 0x24a   :  { %v4468_v10 = vpop.f32.mrf.mxu0  ;;  %v4474_v61 = vpop.f32.mrf.mxu1 }
 0x251   :  { %v5400_v27 = vpop.f32.mrf.mxu0  ;;  %v5402_v13 = vpop.f32.mrf.mxu1 }
 0x252   :  { %v2714_v23 = vsel %vm2704_vm3, %v5402_v13, -inf  ;;  %v2711_v45 = vsel %vm2704_vm3, %v5400_v27, -inf }
 0x253   :  { %v4485_v47 = vpop.f32.mrf.mxu1  ;;  %2715 = vmax.xlane.f32.xlu0 %v2714_v23  ;;  %2712 = vmax.xlane.f32.xlu1 %v2711_v45  ;;  %v4479_v7 = vpop.f32.mrf.mxu0 }
 0x255   :  { %v2103_v20 = vpop.f32.mrf.mxu0  ;;  %v2149_v29 = vpop.f32.mrf.mxu1 }
 0x257   :  { %v4480_v8 = vpop.f32.mrf.mxu0  ;;  %v4486_v9 = vpop.f32.mrf.mxu1 }
 0x25a   :  { %v5408_v16 = vpop.f32.mrf.mxu0 }
 0x25b   :  { %v5410_v17 = vpop.f32.mrf.mxu1  ;;  %v2717_v35 = vsel %vm2704_vm3, %v5408_v16, -inf }
 0x25c   :  { %v2720_v37 = vsel %vm2704_vm3, %v5410_v17, -inf  ;;  %2718 = vmax.xlane.f32.xlu0 %v2717_v35  ;;  %v4491_v33 = vpop.f32.mrf.mxu0 }
 0x25d   :  { %2721 = vmax.xlane.f32.xlu1 %v2720_v37  ;;  %v4497_v34 = vpop.f32.mrf.mxu1 }
 0x25e   :  { %v2195_v15 = vpop.f32.mrf.mxu0 }
 0x25f   :  { %v2241_v6 = vpop.f32.mrf.mxu1 }
 0x260   :  { %v4492_v40 = vpop.f32.mrf.mxu0  ;;  %v1375_v6 = vpop.permute.xlu1 %1374 }
 0x261   :  { %v4498_v38 = vpop.f32.mrf.mxu1 }
 0x264   :  { %v5416_v41 = vpop.f32.mrf.mxu0  ;;  %v5418_v18 = vpop.f32.mrf.mxu1 }
 0x265   :  { %v2726_v5 = vsel %vm2704_vm3, %v5418_v18, -inf  ;;  %v2723_v36 = vsel %vm2704_vm3, %v5416_v41, -inf  ;;  %v1381_v38 = vpop.permute.xlu1 %1380 }
 0x266   :  { %v4509_v31 = vpop.f32.mrf.mxu1  ;;  %2727 = vmax.xlane.f32.xlu0 %v2726_v5  ;;  %2724 = vmax.xlane.f32.xlu1 %v2723_v36  ;;  %v4503_v32 = vpop.f32.mrf.mxu0 }
 0x267   :  { %v1369_v5 = vpop.permute.xlu0 %1368 }
 0x268   :  { %v2287_v42 = vpop.f32.mrf.mxu0  ;;  %v2333_v48 = vpop.f32.mrf.mxu1  ;;  %v1424_v32 = vcombine.low %v1369_v5, %v1381_v38 }
 0x269   :  { %v1359_v36 = vpop.permute.xlu1 %1358 }
 0x26a   :  { %v4504_v19 = vpop.f32.mrf.mxu0  ;;  %v4510_v49 = vpop.f32.mrf.mxu1 }
 0x26b   :  { %v1387_v31 = vpop.permute.xlu0 %1386  ;;  %v1425_v19 = vcombine.high %v1369_v5, %v1381_v38 }
 0x26c   :  { %v1440_v42 = vcombine.low %v1375_v6, %v1387_v31  ;;  %v1441_v49 = vcombine.high %v1375_v6, %v1387_v31 }
 0x26d   :  { %v1365_v48 = vpop.permute.xlu1 %1364 }
 0x26e   :  { %v5424_v50 = vpop.f32.mrf.mxu0  ;;  %v5426_v22 = vpop.f32.mrf.mxu1 }
 0x26f   :  { %v2729_v60 = vsel %vm2704_vm3, %v5424_v50, -inf  ;;  %v2732_v63 = vsel %vm2704_vm3, %v5426_v22, -inf }
 0x270   :  { %2730 = vmax.xlane.f32.xlu0 %v2729_v60  ;;  %v4515_v3 = vpop.f32.mrf.mxu0  ;;  %2733 = vmax.xlane.f32.xlu1 %v2732_v63  ;;  %v4521_v4 = vpop.f32.mrf.mxu1  ;;  %v1432_v60 = vrot.slane %v1424_v32, %v4966_v39  ;;  %v1448_v63 = vrot.slane %v1440_v42, %v4966_v39 }
 0x271   :  { %v1353_v3 = vpop.permute.xlu0 %1352  ;;  %v5464_v4 = vpop.permute.xlu1 %1370 }
 0x272   :  { %v2379_v26 = vpop.f32.mrf.mxu0  ;;  %v2425_v14 = vpop.f32.mrf.mxu1 }
 0x273   :  { %v1439_v26 = vrot.slane %v1425_v19, %v4966_v39  ;;  %v1455_v14 = vrot.slane %v1441_v49, %v4966_v39 }
 0x274   :  { %v4516_v51 = vpop.f32.mrf.mxu0  ;;  %v4522_v52 = vpop.f32.mrf.mxu1 }
 0x275   :  { %v1488_v51 = vcombine.low %v1432_v60, %v1448_v63  ;;  %v1489_v52 = vcombine.high %v1432_v60, %v1448_v63  ;;  %v2868_v63 = vpack.c.bf16 %v5390_v57, %v5390_v57 }
 0x278   :  { %v5432_v53 = vpop.f32.mrf.mxu0  ;;  %v5434_v54 = vpop.f32.mrf.mxu1 }
 0x279   :  { %v2738_v21 = vsel %vm2704_vm3, %v5434_v54, -inf  ;;  %v2735_v55 = vsel %vm2704_vm3, %v5432_v53, -inf }
 0x27a   :  { %2739 = vmax.xlane.f32.xlu1 %v2738_v21  ;;  %v4533_v43 = vpop.f32.mrf.mxu1  ;;  %2736 = vmax.xlane.f32.xlu0 %v2735_v55  ;;  %v4527_v44 = vpop.f32.mrf.mxu0 }
 0x27b   :  { %v1504_v43 = vcombine.low %v1439_v26, %v1455_v14  ;;  %v1505_v44 = vcombine.high %v1439_v26, %v1455_v14 }
 0x27c   :  { %v2471_v58 = vpop.f32.mrf.mxu0  ;;  %v2517_v25 = vpop.f32.mrf.mxu1 }
 0x27e   :  { %v4528_v0 = vpop.f32.mrf.mxu0  ;;  %v4534_v2 = vpop.f32.mrf.mxu1 }
 0x280   :  { %v5440_v62 = vpop.f32.mrf.mxu0  ;;  %v5442_v11 = vpop.f32.mrf.mxu1 }
 0x281   :  { %v2741_v12 = vsel %vm2704_vm3, %v5440_v62, -inf  ;;  %v2744_v45 = vsel %vm2704_vm3, %v5442_v11, -inf }
 0x282   :  { %v4545_v24 = vpop.f32.mrf.mxu1  ;;  %2742 = vmax.xlane.f32.xlu0 %v2741_v12  ;;  %v4539_v10 = vpop.f32.mrf.mxu0  ;;  %v1496_v12 = vrot.slane %v1488_v51, %v4971_v46 }
 0x283   :  { %v1503_v24 = vrot.slane %v1489_v52, %v4971_v46  ;;  %v1512_v10 = vrot.slane %v1504_v43, %v4971_v46 }
 0x284   :  { %v2563_v61 = vpop.f32.mrf.mxu0  ;;  %v2609_v23 = vpop.f32.mrf.mxu1 }
 0x285   :  { %v1519_v61 = vrot.slane %v1505_v44, %v4971_v46  ;;  %v4328_v23 = vcombine.low %v1496_v12, %v1503_v24 }
 0x286   :  { %v4546_v47 = vpop.f32.mrf.mxu1  ;;  %2745 = vmax.xlane.f32.xlu0 %v2744_v45  ;;  %v4540_v7 = vpop.f32.mrf.mxu0  ;;  %v4330_v45 = vcombine.high %v1496_v12, %v1503_v24 }
 0x287   :  { %v4332_v47 = vcombine.low %v1512_v10, %v1519_v61  ;;  %v4334_v7 = vcombine.high %v1512_v10, %v1519_v61 }
 0x288   :  { %v5448_v20 = vpop.f32.mrf.mxu0  ;;  %v5450_v29 = vpop.f32.mrf.mxu1 }
 0x289   :  { %v2750_v15 = vsel %vm2704_vm3, %v5450_v29, -inf  ;;  %v2747_v40 = vsel %vm2704_vm3, %v5448_v20, -inf  ;;  %v5486_v6 = vrot.slane %v4334_v7, %v4966_v39 }
 0x28a   :  { %v4551_v8 = vpop.f32.mrf.mxu0  ;;  %v4557_v9 = vpop.f32.mrf.mxu1 }
 0x28b   :  { %1382 = vrot.lane.b32.xlu1 %v4953_v30, %s4822_s30  ;;  %v1544_v8 = vcombine.low %v1353_v3, %v1365_v48  ;;  %v5479_v9 = vrot.slane %v4330_v45, %v4966_v39 }
 0x28c   :  { %v2655_v35 = vpop.f32.mrf.mxu0  ;;  %v2701_v37 = vpop.f32.mrf.mxu1 }
 0x28d   :  { %v1529_v35 = vcombine.high %v4953_v30, %v1359_v36  ;;  %v1545_v37 = vcombine.high %v1353_v3, %v1365_v48  ;;  %v1552_v31 = vrot.slane %v1544_v8, %v4966_v39  ;;  %v2867_v48 = vpack.c.bf16 %v5388_v56, %v5388_v56 }
 0x28e   :  { %v4552_v33 = vpop.f32.mrf.mxu0  ;;  %v4558_v34 = vpop.f32.mrf.mxu1 }
 0x28f   :  { %1388 = vrot.lane.b32.xlu1 %v4953_v30, %s4823_s4 }
 0x29c   :  { %1376 = vrot.lane.b32.xlu0 %v4953_v30, %s4821_s29 }
 0x2b3   :  { %2751 = vmax.xlane.f32.xlu1 %v2750_v15  ;;  %v5483_v15 = vrot.slane %v4332_v47, %v4966_v39 }
 0x2bb   :  { %2748 = vmax.xlane.f32.xlu0 %v2747_v40 }
 0x2cf   :  { %v2707_v21 = vpop.xlane.xlu0 %2706  ;;  %v2710_v55 = vpop.xlane.xlu1 %2709 }
 0x2d0   :  { %v2753_v58 = vsub.f32 %v5392_v28, %v2707_v21  ;;  %v2754_v25 = vsub.f32 %v5394_v59, %v2710_v55  ;;  %v1528_v28 = vcombine.low %v4953_v30, %v1359_v36  ;;  %v5476_v59 = vrot.slane %v4328_v23, %v4966_v39 }
 0x2d1   :  { %v1543_v30 = vrot.slane %v1529_v35, %v4966_v39  ;;  %v1559_v36 = vrot.slane %v1545_v37, %v4966_v39  ;;  %v2978_v21 = vsel %vm2884_vm2, %v2867_v48, 0 }
 0x2d2   :  { %v2769_v0 = vmul.f32 1.442695, %v2753_v58  ;;  %v2771_v2 = vmul.f32 1.442695, %v2754_v25  ;;  %v1536_v5 = vrot.slane %v1528_v28, %v4966_v39  ;;  %v1744_v19 = vcombine.low %v5476_v59, %v5479_v9 }
 0x2d3   :  { %v1608_v51 = vcombine.low %v1543_v30, %v1559_v36  ;;  %v1609_v52 = vcombine.high %v1543_v30, %v1559_v36  ;;  %v3024_v25 = vsel %vm2884_vm2, %v2868_v63, 0  ;;  %v1745_v28 = vcombine.high %v5476_v59, %v5479_v9 }
 0x2d4   :  { %4678 = vpow2.f32 %v2769_v0  ;;  %v1592_v49 = vcombine.low %v1536_v5, %v1552_v31  ;;  %v1593_v60 = vcombine.high %v1536_v5, %v1552_v31  ;;  %v1752_v55 = vrot.slane %v1744_v19, %v4971_v46 }
 0x2d5   :  { %4680 = vpow2.f32 %v2771_v2  ;;  %v1616_v24 = vrot.slane %v1608_v51, %v4971_v46  ;;  %v1623_v10 = vrot.slane %v1609_v52, %v4971_v46 }
 0x2d6   :  { %v1600_v44 = vrot.slane %v1592_v49, %v4971_v46  ;;  %v1607_v57 = vrot.slane %v1593_v60, %v4971_v46 }
 0x2d7   :  { %v4339_v35 = vcombine.low %v1616_v24, %v1623_v10  ;;  %v4341_v37 = vcombine.high %v1616_v24, %v1623_v10 }
 0x2d8   :  { %v4335_v45 = vcombine.low %v1600_v44, %v1607_v57  ;;  %v4337_v8 = vcombine.high %v1600_v44, %v1607_v57 }
 0x2d9   :  { %v5540_v19 = vrot.slane %v4341_v37, %v4966_v39 }
 0x2da   :  { %v5533_v9 = vrot.slane %v4337_v8, %v4966_v39 }
 0x2dc   :  { %v2716_v33 = vpop.xlane.xlu0 %2715  ;;  %v2713_v34 = vpop.xlane.xlu1 %2712 }
 0x2dd   :  { %v2756_v40 = vsub.f32 %v5402_v13, %v2716_v33  ;;  %v2755_v38 = vsub.f32 %v5400_v27, %v2713_v34  ;;  %v1776_v27 = vcombine.low %v5483_v15, %v5486_v6 }
 0x2df   :  { %v2775_v32 = vmul.f32 1.442695, %v2756_v40  ;;  %v2773_v42 = vmul.f32 1.442695, %v2755_v38  ;;  %v1784_v43 = vrot.slane %v1776_v27, %v4971_v46  ;;  %v5527_v40 = vrot.slane %v4335_v45, %v4966_v39 }
 0x2e1   :  { %4682 = vpow2.f32 %v2775_v32  ;;  %v4679_v13 = vpop.eup %4678  ;;  %v1796_v7 = vcombine.low %v1752_v55, %v1784_v43 }
 0x2e2   :  { %4684 = vpow2.f32 %v2773_v42  ;;  %v4681_v3 = vpop.eup %4680  ;;  %v2801_v26 = vsel %vm2704_vm3, %v4679_v13, 0.0  ;;  %v2849_v14 = vpack.c.bf16 %v4679_v13, %v4679_v13  ;;  %v1759_v42 = vrot.slane %v1745_v28, %v4971_v46 }
 0x2e3   :  { %2802 = vadd.xlane.f32.xlu0 %v2801_v26  ;;  %v2850_v56 = vpack.c.bf16 %v4681_v3, %v4681_v3  ;;  %v2804_v12 = vsel %vm2704_vm3, %v4681_v3, 0.0  ;;  %v2869_v38 = vpack.c.bf16 %v1796_v7, %v1796_v7 }
 0x2e4   :  { %4562 = vmatmul.mubr.msk.bf16.vlgmr.msra.gmra.mxu0 %vm2704_vm3, %v2849_v14 }
 0x2e5   :  { %v2719_v58 = vpop.xlane.xlu0 %2718  ;;  %4568 = vmatmul.mubr.msk.bf16.vlgmr.msra.gmra.mxu1 %vm2704_vm3, %v2850_v56  ;;  %4572 = vmatpush3.bf16.msra.mxu0 %v2978_v21  ;;  %v3070_v60 = vsel %vm2884_vm2, %v2869_v38, 0 }
 0x2e6   :  { %v2757_v0 = vsub.f32 %v5408_v16, %v2719_v58  ;;  %v2722_v2 = vpop.xlane.xlu1 %2721  ;;  %4578 = vmatpush3.bf16.msra.mxu1 %v3024_v25  ;;  %4573 = vmatprep.mubr.msk.bf16.mxu0 %vm4816_vm0, %v4815_v1  ;;  %v1797_v16 = vcombine.high %v1752_v55, %v1784_v43 }
 0x2e7   :  { %v2758_v61 = vsub.f32 %v5410_v17, %v2722_v2  ;;  %2805 = vadd.xlane.f32.xlu0 %v2804_v12  ;;  %4579 = vmatprep.mubr.msk.bf16.mxu1 %vm4816_vm0, %v4815_v1  ;;  %v1777_v17 = vcombine.high %v5483_v15, %v5486_v6  ;;  %v5536_v15 = vrot.slane %v4339_v35, %v4966_v39 }
 0x2e8   :  { %v2777_v23 = vmul.f32 1.442695, %v2757_v0  ;;  %4583 = vmatprep.subr.bf16.mxu0 %v4815_v1  ;;  %4589 = vmatprep.subr.bf16.mxu1 %v4815_v1  ;;  %v2870_v33 = vpack.c.bf16 %v1797_v16, %v1797_v16 }
 0x2e9   :  { %v2779_v47 = vmul.f32 1.442695, %v2758_v61  ;;  %v1791_v59 = vrot.slane %v1777_v17, %v4971_v46  ;;  %v1896_v14 = vcombine.low %v5536_v15, %v5540_v19 }
 0x2ea   :  { %4686 = vpow2.f32 %v2777_v23  ;;  %v3116_v49 = vsel %vm2884_vm2, %v2870_v33, 0 }
 0x2eb   :  { %4688 = vpow2.f32 %v2779_v47  ;;  %v1798_v26 = vcombine.low %v1759_v42, %v1791_v59  ;;  %v1904_v57 = vrot.slane %v1896_v14, %v4971_v46  ;;  %v1897_v47 = vcombine.high %v5536_v15, %v5540_v19 }
 0x2ed   :  { %v2871_v51 = vpack.c.bf16 %v1798_v26, %v1798_v26 }
 0x2ee   :  { %v4683_v34 = vpop.eup %4682 }
 0x2ef   :  { %v4685_v5 = vpop.eup %4684  ;;  %v2810_v31 = vsel %vm2704_vm3, %v4683_v34, 0.0  ;;  %v2852_v32 = vpack.c.bf16 %v4683_v34, %v4683_v34  ;;  %v2728_v6 = vpop.xlane.xlu0 %2727  ;;  %v3162_v24 = vsel %vm2884_vm2, %v2871_v51, 0  ;;  %v1911_v34 = vrot.slane %v1897_v47, %v4971_v46 }
 0x2f0   :  { %v2725_v30 = vpop.xlane.xlu1 %2724  ;;  %2811 = vadd.xlane.f32.xlu0 %v2810_v31  ;;  %v2807_v36 = vsel %vm2704_vm3, %v4685_v5, 0.0  ;;  %v2851_v48 = vpack.c.bf16 %v4685_v5, %v4685_v5  ;;  %v2760_v27 = vsub.f32 %v5418_v18, %v2728_v6  ;;  %v1864_v18 = vcombine.low %v5527_v40, %v5533_v9 }
 0x2f1   :  { %v2759_v13 = vsub.f32 %v5416_v41, %v2725_v30  ;;  %2808 = vadd.xlane.f32.xlu1 %v2807_v36  ;;  %4580 = vmatmul.mubr.msk.bf16.vlgmr.msra.gmra.mxu1 %vm2704_vm3, %v2852_v32  ;;  %v1799_v41 = vcombine.high %v1759_v42, %v1791_v59 }
 0x2f2   :  { %4574 = vmatmul.mubr.msk.bf16.vlgmr.msra.gmra.mxu0 %vm2704_vm3, %v2851_v48  ;;  %4590 = vmatpush3.bf16.msra.mxu1 %v3116_v49  ;;  %v2783_v63 = vmul.f32 1.442695, %v2760_v27  ;;  %v1872_v44 = vrot.slane %v1864_v18, %v4971_v46 }
 0x2f3   :  { %v2781_v3 = vmul.f32 1.442695, %v2759_v13  ;;  %4584 = vmatpush3.bf16.msra.mxu0 %v3070_v60  ;;  %4585 = vmatprep.mubr.msk.bf16.mxu0 %vm4816_vm0, %v4815_v1  ;;  %v2872_v56 = vpack.c.bf16 %v1799_v41, %v1799_v41 }
 0x2f4   :  { %4591 = vmatprep.mubr.msk.bf16.mxu1 %vm4816_vm0, %v4815_v1  ;;  %4595 = vmatprep.subr.bf16.mxu0 %v4815_v1  ;;  %4690 = vpow2.f32 %v2783_v63  ;;  %v1929_v16 = vcombine.high %v1872_v44, %v1904_v57  ;;  %v1928_v45 = vcombine.low %v1872_v44, %v1904_v57 }
 0x2f5   :  { %4601 = vmatprep.subr.bf16.mxu1 %v4815_v1  ;;  %4692 = vpow2.f32 %v2781_v3  ;;  %v3208_v61 = vsel %vm2884_vm2, %v2872_v56, 0 }
 0x2f6   :  { %v2874_v7 = vpack.c.bf16 %v1929_v16, %v1929_v16  ;;  %v2873_v17 = vpack.c.bf16 %v1928_v45, %v1928_v45 }
 0x2f7   :  { %v4687_v52 = vpop.eup %4686 }
 0x2f8   :  { %v4689_v21 = vpop.eup %4688  ;;  %v2813_v55 = vsel %vm2704_vm3, %v4687_v52, 0.0  ;;  %v2853_v43 = vpack.c.bf16 %v4687_v52, %v4687_v52  ;;  %v3300_v59 = vsel %vm2884_vm2, %v2874_v7, 0 }
 0x2f9   :  { %v2731_v58 = vpop.xlane.xlu0 %2730  ;;  %2814 = vadd.xlane.f32.xlu1 %v2813_v55  ;;  %v2816_v25 = vsel %vm2704_vm3, %v4689_v21, 0.0  ;;  %v2854_v0 = vpack.c.bf16 %v4689_v21, %v4689_v21  ;;  %v2734_v12 = vpop.xlane.xlu1 %2733 }
 0x2fa   :  { %v2761_v2 = vsub.f32 %v5424_v50, %v2731_v58  ;;  %2817 = vadd.xlane.f32.xlu0 %v2816_v25  ;;  %4586 = vmatmul.mubr.msk.bf16.vlgmr.msra.gmra.mxu0 %vm2704_vm3, %v2853_v43  ;;  %v2762_v10 = vsub.f32 %v5426_v22, %v2734_v12  ;;  %v1865_v22 = vcombine.high %v5527_v40, %v5533_v9  ;;  %v3254_v9 = vsel %vm2884_vm2, %v2873_v17, 0 }
 0x2fb   :  { %4592 = vmatmul.mubr.msk.bf16.vlgmr.msra.gmra.mxu1 %vm2704_vm3, %v2854_v0  ;;  %4596 = vmatpush3.bf16.msra.mxu0 %v3162_v24 }
 0x2fc   :  { %v2785_v23 = vmul.f32 1.442695, %v2761_v2  ;;  %4602 = vmatpush3.bf16.msra.mxu1 %v3208_v61  ;;  %4597 = vmatprep.mubr.msk.bf16.mxu0 %vm4816_vm0, %v4815_v1  ;;  %v2787_v50 = vmul.f32 1.442695, %v2762_v10  ;;  %v1879_v33 = vrot.slane %v1865_v22, %v4971_v46 }
 0x2fd   :  { %4603 = vmatprep.mubr.msk.bf16.mxu1 %vm4816_vm0, %v4815_v1  ;;  %4607 = vmatprep.subr.bf16.mxu0 %v4815_v1 }
 0x2fe   :  { %4694 = vpow2.f32 %v2785_v23  ;;  %4613 = vmatprep.subr.bf16.mxu1 %v4815_v1  ;;  %v1930_v30 = vcombine.low %v1879_v33, %v1911_v34 }
 0x2ff   :  { %4696 = vpow2.f32 %v2787_v50 }
 0x301   :  { %v4691_v28 = vpop.eup %4690 }
 0x302   :  { %v4693_v8 = vpop.eup %4692  ;;  %v2822_v35 = vsel %vm2704_vm3, %v4691_v28, 0.0  ;;  %v2856_v37 = vpack.c.bf16 %v4691_v28, %v4691_v28 }
 0x303   :  { %v2737_v38 = vpop.xlane.xlu0 %2736  ;;  %v2740_v5 = vpop.xlane.xlu1 %2739  ;;  %2823 = vadd.xlane.f32.xlu0 %v2822_v35  ;;  %v2819_v40 = vsel %vm2704_vm3, %v4693_v8, 0.0  ;;  %v2855_v31 = vpack.c.bf16 %v4693_v8, %v4693_v8 }
 0x304   :  { %v2763_v32 = vsub.f32 %v5432_v53, %v2737_v38  ;;  %v2764_v42 = vsub.f32 %v5434_v54, %v2740_v5  ;;  %2820 = vadd.xlane.f32.xlu1 %v2819_v40  ;;  %4604 = vmatmul.mubr.msk.bf16.vlgmr.msra.gmra.mxu1 %vm2704_vm3, %v2856_v37  ;;  %v1931_v53 = vcombine.high %v1879_v33, %v1911_v34 }
 0x305   :  { %4598 = vmatmul.mubr.msk.bf16.vlgmr.msra.gmra.mxu0 %vm2704_vm3, %v2855_v31  ;;  %4614 = vmatpush3.bf16.msra.mxu1 %v3300_v59  ;;  %v2875_v54 = vpack.c.bf16 %v1930_v30, %v1930_v30 }
 0x306   :  { %v2789_v15 = vmul.f32 1.442695, %v2763_v32  ;;  %v2791_v6 = vmul.f32 1.442695, %v2764_v42  ;;  %4608 = vmatpush3.bf16.msra.mxu0 %v3254_v9  ;;  %4609 = vmatprep.mubr.msk.bf16.mxu0 %vm4816_vm0, %v4815_v1  ;;  %v2876_v19 = vpack.c.bf16 %v1931_v53, %v1931_v53 }
 0x307   :  { %4615 = vmatprep.mubr.msk.bf16.mxu1 %vm4816_vm0, %v4815_v1  ;;  %4619 = vmatprep.subr.bf16.mxu0 %v4815_v1  ;;  %v1383_v63 = vpop.permute.xlu1 %1382  ;;  %v3346_v18 = vsel %vm2884_vm2, %v2875_v54, 0 }
 0x308   :  { %4698 = vpow2.f32 %v2789_v15  ;;  %4625 = vmatprep.subr.bf16.mxu1 %v4815_v1  ;;  %v1560_v52 = vcombine.low %v5464_v4, %v1383_v63  ;;  %v1561_v56 = vcombine.high %v5464_v4, %v1383_v63 }
 0x309   :  { %4700 = vpow2.f32 %v2791_v6 }
 0x30a   :  { %v1568_v58 = vrot.slane %v1560_v52, %v4966_v39  ;;  %v1575_v25 = vrot.slane %v1561_v56, %v4966_v39 }
 0x30b   :  { %v4695_v36 = vpop.eup %4694  ;;  %v2743_v48 = vpop.xlane.xlu0 %2742 }
 0x30c   :  { %v4697_v27 = vpop.eup %4696  ;;  %v2765_v13 = vsub.f32 %v5440_v62, %v2743_v48  ;;  %v2825_v49 = vsel %vm2704_vm3, %v4695_v36, 0.0  ;;  %v2857_v60 = vpack.c.bf16 %v4695_v36, %v4695_v36  ;;  %v3392_v62 = vsel %vm2884_vm2, %v2876_v19, 0  ;;  %v1389_v55 = vpop.permute.xlu1 %1388 }
 0x30d   :  { %2826 = vadd.xlane.f32.xlu1 %v2825_v49  ;;  %v2828_v3 = vsel %vm2704_vm3, %v4697_v27, 0.0  ;;  %v2858_v26 = vpack.c.bf16 %v4697_v27, %v4697_v27 }
 0x30e   :  { %v2793_v41 = vmul.f32 1.442695, %v2765_v13  ;;  %2829 = vadd.xlane.f32.xlu0 %v2828_v3  ;;  %4610 = vmatmul.mubr.msk.bf16.vlgmr.msra.gmra.mxu0 %vm2704_vm3, %v2857_v60 }
 0x30f   :  { %v2746_v14 = vpop.xlane.xlu0 %2745  ;;  %4616 = vmatmul.mubr.msk.bf16.vlgmr.msra.gmra.mxu1 %vm2704_vm3, %v2858_v26  ;;  %4620 = vmatpush3.bf16.msra.mxu0 %v3346_v18 }
 0x310   :  { %4702 = vpow2.f32 %v2793_v41  ;;  %v2766_v51 = vsub.f32 %v5442_v11, %v2746_v14  ;;  %4626 = vmatpush3.bf16.msra.mxu1 %v3392_v62  ;;  %4621 = vmatprep.mubr.msk.bf16.mxu0 %vm4816_vm0, %v4815_v1 }
 0x311   :  { %4627 = vmatprep.mubr.msk.bf16.mxu1 %vm4816_vm0, %v4815_v1  ;;  %4631 = vmatprep.subr.bf16.mxu0 %v4815_v1 }
 0x312   :  { %v2795_v21 = vmul.f32 1.442695, %v2766_v51  ;;  %4637 = vmatprep.subr.bf16.mxu1 %v4815_v1 }
 0x313   :  { %v1377_v43 = vpop.permute.xlu0 %1376 }
 0x314   :  { %4704 = vpow2.f32 %v2795_v21  ;;  %v1576_v11 = vcombine.low %v1377_v43, %v1389_v55  ;;  %v1577_v44 = vcombine.high %v1377_v43, %v1389_v55 }
 0x315   :  { %v4699_v57 = vpop.eup %4698 }
 0x316   :  { %v4701_v0 = vpop.eup %4700  ;;  %v1584_v4 = vrot.slane %v1576_v11, %v4966_v39  ;;  %v1591_v2 = vrot.slane %v1577_v44, %v4966_v39  ;;  %v2831_v12 = vsel %vm2704_vm3, %v4699_v57, 0.0  ;;  %v2859_v24 = vpack.c.bf16 %v4699_v57, %v4699_v57 }
 0x317   :  { %2832 = vadd.xlane.f32.xlu1 %v2831_v12  ;;  %v2834_v10 = vsel %vm2704_vm3, %v4701_v0, 0.0  ;;  %v2860_v61 = vpack.c.bf16 %v4701_v0, %v4701_v0 }
 0x318   :  { %v1624_v23 = vcombine.low %v1568_v58, %v1584_v4  ;;  %v1625_v16 = vcombine.high %v1568_v58, %v1584_v4  ;;  %v1640_v50 = vcombine.low %v1575_v25, %v1591_v2  ;;  %v1641_v45 = vcombine.high %v1575_v25, %v1591_v2  ;;  %2835 = vadd.xlane.f32.xlu0 %v2834_v10 }
 0x319   :  { %4622 = vmatmul.mubr.msk.bf16.vlgmr.msra.gmra.mxu0 %vm2704_vm3, %v2859_v24  ;;  %4628 = vmatmul.mubr.msk.bf16.vlgmr.msra.gmra.mxu1 %vm2704_vm3, %v2860_v61 }
 0x31a   :  { %v1632_v22 = vrot.slane %v1624_v23, %v4971_v46  ;;  %v1639_v47 = vrot.slane %v1625_v16, %v4971_v46  ;;  %v1648_v7 = vrot.slane %v1640_v50, %v4971_v46  ;;  %v1655_v28 = vrot.slane %v1641_v45, %v4971_v46  ;;  %4633 = vmatprep.mubr.msk.bf16.mxu0 %vm4816_vm0, %v4815_v1 }
 0x31b   :  { %4639 = vmatprep.mubr.msk.bf16.mxu1 %vm4816_vm0, %v4815_v1 }
 0x31c   :  { %v4336_v17 = vcombine.low %v1632_v22, %v1639_v47  ;;  %v4338_v8 = vcombine.high %v1632_v22, %v1639_v47  ;;  %v4340_v35 = vcombine.low %v1648_v7, %v1655_v28  ;;  %v4342_v37 = vcombine.high %v1648_v7, %v1655_v28 }
 0x31d   :  { %v4703_v33 = vpop.eup %4702 }
 0x31e   :  { %v1815_v34 = vrot.slane %v4336_v17, %v4966_v39  ;;  %v1831_v38 = vrot.slane %v4338_v8, %v4966_v39  ;;  %v1847_v5 = vrot.slane %v4340_v35, %v4966_v39  ;;  %v1863_v40 = vrot.slane %v4342_v37, %v4966_v39 }
 0x31f   :  { %v2837_v31 = vsel %vm2704_vm3, %v4703_v33, 0.0  ;;  %v2861_v18 = vpack.c.bf16 %v4703_v33, %v4703_v33 }
 0x320   :  { %2838 = vadd.xlane.f32.xlu1 %v2837_v31  ;;  %v1880_v32 = vcombine.low %v1815_v34, %v1831_v38  ;;  %v1912_v42 = vcombine.low %v1847_v5, %v1863_v40  ;;  %v1881_v59 = vcombine.high %v1815_v34, %v1831_v38  ;;  %v1913_v9 = vcombine.high %v1847_v5, %v1863_v40 }
 0x321   :  { %v4705_v15 = vpop.eup %4704 }
 0x322   :  { %v2840_v6 = vsel %vm2704_vm3, %v4705_v15, 0.0  ;;  %v1888_v30 = vrot.slane %v1880_v32, %v4971_v46  ;;  %v1920_v53 = vrot.slane %v1912_v42, %v4971_v46  ;;  %v1895_v54 = vrot.slane %v1881_v59, %v4971_v46 }
 0x323   :  { %2841 = vadd.xlane.f32.xlu0 %v2840_v6  ;;  %v1927_v36 = vrot.slane %v1913_v9, %v4971_v46  ;;  %v2862_v14 = vpack.c.bf16 %v4705_v15, %v4705_v15 }
 0x324   :  { %v1932_v48 = vcombine.low %v1888_v30, %v1920_v53  ;;  %v1933_v19 = vcombine.high %v1888_v30, %v1920_v53 }
 0x325   :  { %v1934_v27 = vcombine.low %v1895_v54, %v1927_v36  ;;  %v1935_v13 = vcombine.high %v1895_v54, %v1927_v36 }
 0x326   :  { %v2877_v49 = vpack.c.bf16 %v1932_v48, %v1932_v48  ;;  %v2878_v60 = vpack.c.bf16 %v1933_v19, %v1933_v19 }
 0x327   :  { %v2879_v26 = vpack.c.bf16 %v1934_v27, %v1934_v27  ;;  %v2880_v41 = vpack.c.bf16 %v1935_v13, %v1935_v13 }
 0x328   :  { %v3438_v63 = vsel %vm2884_vm2, %v2877_v49, 0  ;;  %v3484_v3 = vsel %vm2884_vm2, %v2878_v60, 0 }
 0x329   :  { %4632 = vmatpush3.bf16.msra.mxu0 %v3438_v63  ;;  %4638 = vmatpush3.bf16.msra.mxu1 %v3484_v3  ;;  %v3530_v62 = vsel %vm2884_vm2, %v2879_v26, 0  ;;  %v3576_v51 = vsel %vm2884_vm2, %v2880_v41, 0 }
 0x32a   :  { %4643 = vmatprep.subr.bf16.mxu0 %v4815_v1  ;;  %4649 = vmatprep.subr.bf16.mxu1 %v4815_v1 }
 0x32c   :  { %4634 = vmatmul.mubr.msk.bf16.vlgmr.msra.gmra.mxu0 %vm2704_vm3, %v2861_v18  ;;  %4640 = vmatmul.mubr.msk.bf16.vlgmr.msra.gmra.mxu1 %vm2704_vm3, %v2862_v14 }
 0x32d   :  { %4644 = vmatpush3.bf16.msra.mxu0 %v3530_v62  ;;  %4650 = vmatpush3.bf16.msra.mxu1 %v3576_v51 }
 0x32e   :  { %4651 = vmatprep.mubr.msk.bf16.mxu1 %vm4816_vm0, %v4815_v1  ;;  %4645 = vmatprep.mubr.msk.bf16.mxu0 %vm4816_vm0, %v4815_v1 }
 0x33c   :  { %v2752_v52 = vpop.xlane.xlu1 %2751 }
 0x33d   :  { %v2768_v56 = vsub.f32 %v5450_v29, %v2752_v52 }
 0x33f   :  { %v2799_v21 = vmul.f32 1.442695, %v2768_v56 }
 0x341   :  { %4706 = vpow2.f32 %v2799_v21 }
 0x344   :  { %v2749_v55 = vpop.xlane.xlu0 %2748 }
 0x345   :  { %v2767_v43 = vsub.f32 %v5448_v20, %v2749_v55 }
 0x347   :  { %v2797_v11 = vmul.f32 1.442695, %v2767_v43 }
 0x349   :  { %4708 = vpow2.f32 %v2797_v11 }
 0x34e   :  { %v4707_v44 = vpop.eup %4706 }
 0x34f   :  { %v2846_v57 = vsel %vm2704_vm3, %v4707_v44, 0.0  ;;  %v2864_v58 = vpack.c.bf16 %v4707_v44, %v4707_v44 }
 0x350   :  { %2847 = vadd.xlane.f32.xlu0 %v2846_v57 }
 0x351   :  { %4652 = vmatmul.mubr.msk.bf16.vlgmr.msra.gmra.mxu1 %vm2704_vm3, %v2864_v58 }
 0x356   :  { %v4709_v25 = vpop.eup %4708 }
 0x357   :  { %v2843_v1 = vsel %vm2704_vm3, %v4709_v25, 0.0  ;;  %v2863_v0 = vpack.c.bf16 %v4709_v25, %v4709_v25 }
 0x358   :  { %2844 = vadd.xlane.f32.xlu1 %v2843_v1 }
 0x359   :  { %4646 = vmatmul.mubr.msk.bf16.vlgmr.msra.gmra.mxu0 %vm2704_vm3, %v2863_v0 }
 0x36c   :  { %v2803_v29 = vpop.xlane.xlu0 %2802 }
 0x36d   :  { %4710 = vrcp.f32 %v2803_v29 }
 0x370   :  { %v2806_v4 = vpop.xlane.xlu0 %2805 }
 0x371   :  { %4712 = vrcp.f32 %v2806_v4 }
 0x379   :  { %v2812_v2 = vpop.xlane.xlu0 %2811 }
 0x37a   :  { %v2809_v20 = vpop.xlane.xlu1 %2808  ;;  %4714 = vrcp.f32 %v2812_v2  ;;  %v4711_v22 = vpop.eup %4710 }
 0x37b   :  { %4716 = vrcp.f32 %v2809_v20 }
 0x37e   :  { %v4713_v47 = vpop.eup %4712 }
 0x382   :  { %v2815_v17 = vpop.xlane.xlu1 %2814 }
 0x383   :  { %v2818_v7 = vpop.xlane.xlu0 %2817  ;;  %4718 = vrcp.f32 %v2815_v17 }
 0x384   :  { %4720 = vrcp.f32 %v2818_v7 }
 0x387   :  { %v4715_v28 = vpop.eup %4714 }
 0x388   :  { %v4717_v35 = vpop.eup %4716 }
 0x38c   :  { %v2824_v31 = vpop.xlane.xlu0 %2823 }
 0x38d   :  { %v2821_v9 = vpop.xlane.xlu1 %2820  ;;  %4722 = vrcp.f32 %v2824_v31 }
 0x38e   :  { %4724 = vrcp.f32 %v2821_v9 }
 0x3a4   :  { %v2922_v12 = vpop.f32.mrf.mxu0 }
 0x3a5   :  { %v2968_v24 = vpop.f32.mrf.mxu1  ;;  %v3634_v38 = vmul.f32 %v4711_v22, %v2922_v12 }
 0x3a6   :  { %v4563_v10 = vpop.f32.mrf.mxu0  ;;  %v3635_v37 = vmul.f32 %v4713_v47, %v2968_v24  ;;  %v4719_v24 = vpop.eup %4718 }
 0x3a7   :  { %v4569_v61 = vpop.f32.mrf.mxu1  ;;  %v2827_v47 = vpop.xlane.xlu1 %2826 }
 0x3a8   :  { %v2925_v23 = vpop.f32.mrf.mxu0  ;;  %v4721_v61 = vpop.eup %4720  ;;  %4726 = vrcp.f32 %v2827_v47 }
 0x3a9   :  { %v2971_v16 = vpop.f32.mrf.mxu1  ;;  %v4723_v22 = vpop.eup %4722 }
 0x3aa   :  { %v4564_v50 = vpop.f32.mrf.mxu0  ;;  %v4725_v7 = vpop.eup %4724 }
 0x3ab   :  { %v4570_v45 = vpop.f32.mrf.mxu1 }
 0x3b1   :  { %v3060_v8 = vpop.f32.mrf.mxu1 }
 0x3b2   :  { %v3014_v33 = vpop.f32.mrf.mxu0  ;;  %v3637_v34 = vmul.f32 %v4715_v28, %v3060_v8  ;;  %v2830_v28 = vpop.xlane.xlu0 %2829 }
 0x3b3   :  { %v3636_v5 = vmul.f32 %v4717_v35, %v3014_v33  ;;  %v4581_v40 = vpop.f32.mrf.mxu1  ;;  %4728 = vrcp.f32 %v2830_v28 }
 0x3b4   :  { %v3666_v32 = vcombine.low %v3635_v37, %v3637_v34  ;;  %v3667_v42 = vcombine.high %v3635_v37, %v3637_v34  ;;  %v4575_v59 = vpop.f32.mrf.mxu0 }
 0x3b5   :  { %v3650_v15 = vcombine.low %v3634_v38, %v3636_v5  ;;  %v3651_v6 = vcombine.high %v3634_v38, %v3636_v5  ;;  %v3063_v30 = vpop.f32.mrf.mxu1 }
 0x3b6   :  { %v3674_v53 = vrot.slane %v3666_v32, %v4966_v39  ;;  %v3681_v54 = vrot.slane %v3667_v42, %v4966_v39  ;;  %v3017_v36 = vpop.f32.mrf.mxu0  ;;  %v2833_v32 = vpop.xlane.xlu1 %2832 }
 0x3b7   :  { %v3658_v48 = vrot.slane %v3650_v15, %v4966_v39  ;;  %v3665_v19 = vrot.slane %v3651_v6, %v4966_v39  ;;  %v4582_v27 = vpop.f32.mrf.mxu1  ;;  %v2836_v15 = vpop.xlane.xlu0 %2835  ;;  %4730 = vrcp.f32 %v2833_v32 }
 0x3b8   :  { %v4576_v13 = vpop.f32.mrf.mxu0  ;;  %4732 = vrcp.f32 %v2836_v15 }
 0x3b9   :  { %v3714_v49 = vcombine.low %v3658_v48, %v3674_v53  ;;  %v3715_v60 = vcombine.high %v3658_v48, %v3674_v53  ;;  %v3730_v63 = vcombine.low %v3665_v19, %v3681_v54  ;;  %v3731_v3 = vcombine.high %v3665_v19, %v3681_v54 }
 0x3ba   :  { %v3106_v62 = vpop.f32.mrf.mxu0 }
 0x3bb   :  { %v3722_v26 = vrot.slane %v3714_v49, %v4971_v46  ;;  %v3729_v41 = vrot.slane %v3715_v60, %v4971_v46  ;;  %v3738_v18 = vrot.slane %v3730_v63, %v4971_v46  ;;  %v3745_v14 = vrot.slane %v3731_v3, %v4971_v46  ;;  %v3152_v51 = vpop.f32.mrf.mxu1 }
 0x3bc   :  { %v4587_v43 = vpop.f32.mrf.mxu0  ;;  %v3639_v33 = vmul.f32 %v4721_v61, %v3152_v51  ;;  %v3638_v5 = vmul.f32 %v4719_v24, %v3106_v62  ;;  %v4727_v24 = vpop.eup %4726 }
 0x3bd   :  { %v4375_v52 = vcombine.low %v3722_v26, %v3729_v41  ;;  %v4377_v56 = vcombine.high %v3722_v26, %v3729_v41  ;;  %v4379_v21 = vcombine.low %v3738_v18, %v3745_v14  ;;  %v4381_v55 = vcombine.high %v3738_v18, %v3745_v14  ;;  %v4593_v11 = vpop.f32.mrf.mxu1 }
 0x3be   :  { %v3109_v44 = vpop.f32.mrf.mxu0 }
 0x3bf   :  { %v3930_v57 = vrot.slane %v4375_v52, %v4966_v39  ;;  %v3946_v58 = vrot.slane %v4377_v56, %v4966_v39  ;;  %v3962_v25 = vrot.slane %v4379_v21, %v4966_v39  ;;  %v3978_v1 = vrot.slane %v4381_v55, %v4966_v39  ;;  %v3155_v0 = vpop.f32.mrf.mxu1 }
 0x3c0   :  { %v4588_v29 = vpop.f32.mrf.mxu0  ;;  %v4729_v61 = vpop.eup %4728 }
 0x3c1   :  { %v3987_v4 = vcombine.high %v3930_v57, %v3946_v58  ;;  %v4019_v2 = vcombine.high %v3962_v25, %v3978_v1  ;;  %v3986_v20 = vcombine.low %v3930_v57, %v3946_v58  ;;  %v4018_v12 = vcombine.low %v3962_v25, %v3978_v1  ;;  %v4594_v10 = vpop.f32.mrf.mxu1 }
 0x3c3   :  { %v4001_v23 = vrot.slane %v3987_v4, %v4971_v46  ;;  %v4033_v16 = vrot.slane %v4019_v2, %v4971_v46  ;;  %v5669_v50 = vrot.slane %v3986_v20, %v4971_v46  ;;  %v5672_v45 = vrot.slane %v4018_v12, %v4971_v46 }
 0x3c4   :  { %v3244_v17 = vpop.f32.mrf.mxu1 }
 0x3c5   :  { %v4053_v8 = vcombine.high %v4001_v23, %v4033_v16  ;;  %v4051_v35 = vcombine.high %v5669_v50, %v5672_v45  ;;  %v4050_v37 = vcombine.low %v5669_v50, %v5672_v45  ;;  %v3198_v34 = vpop.f32.mrf.mxu0  ;;  %v3641_v38 = vmul.f32 %v4723_v22, %v3244_v17  ;;  %v4731_v22 = vpop.eup %4730 }
 0x3c6   :  { %v3640_v40 = vmul.f32 %v4725_v7, %v3198_v34  ;;  %v4605_v31 = vpop.f32.mrf.mxu1  ;;  %v4052_v54 = vcombine.low %v4001_v23, %v4033_v16  ;;  %v4733_v47 = vpop.eup %4732 }
 0x3c7   :  { %4212 = vrot.lane.b32.xlu0 %v4053_v8, %s4821_s29  ;;  %4196 = vrot.lane.b32.xlu1 %v4051_v35, %s4823_s4  ;;  %v3698_v42 = vcombine.low %v3639_v33, %v3641_v38  ;;  %v3699_v59 = vcombine.high %v3639_v33, %v3641_v38  ;;  %v4599_v9 = vpop.f32.mrf.mxu0 }
 0x3c8   :  { %v3682_v6 = vcombine.low %v3638_v5, %v3640_v40  ;;  %v3683_v30 = vcombine.high %v3638_v5, %v3640_v40  ;;  %v3247_v53 = vpop.f32.mrf.mxu1 }
 0x3c9   :  { %v3706_v36 = vrot.slane %v3698_v42, %v4966_v39  ;;  %v3713_v48 = vrot.slane %v3699_v59, %v4966_v39  ;;  %v3201_v19 = vpop.f32.mrf.mxu0 }
 0x3ca   :  { %v3690_v27 = vrot.slane %v3682_v6, %v4966_v39  ;;  %v3697_v13 = vrot.slane %v3683_v30, %v4966_v39  ;;  %v4606_v49 = vpop.f32.mrf.mxu1 }
 0x3cb   :  { %4204 = vrot.lane.b32.xlu1 %v4052_v54, %s4822_s30  ;;  %v4600_v60 = vpop.f32.mrf.mxu0 }
 0x3cc   :  { %v3746_v63 = vcombine.low %v3690_v27, %v3706_v36  ;;  %v3747_v3 = vcombine.high %v3690_v27, %v3706_v36  ;;  %v3762_v26 = vcombine.low %v3697_v13, %v3713_v48  ;;  %v3763_v41 = vcombine.high %v3697_v13, %v3713_v48 }
 0x3ce   :  { %v3754_v18 = vrot.slane %v3746_v63, %v4971_v46  ;;  %v3761_v14 = vrot.slane %v3747_v3, %v4971_v46  ;;  %v3770_v62 = vrot.slane %v3762_v26, %v4971_v46  ;;  %v3777_v51 = vrot.slane %v3763_v41, %v4971_v46  ;;  %v3290_v52 = vpop.f32.mrf.mxu0 }
 0x3cf   :  { %v3336_v56 = vpop.f32.mrf.mxu1  ;;  %v3642_v8 = vmul.f32 %v4727_v24, %v3290_v52 }
 0x3d0   :  { %v4376_v21 = vcombine.low %v3754_v18, %v3761_v14  ;;  %v4378_v55 = vcombine.high %v3754_v18, %v3761_v14  ;;  %v4380_v43 = vcombine.low %v3770_v62, %v3777_v51  ;;  %v4382_v11 = vcombine.high %v3770_v62, %v3777_v51  ;;  %v4611_v44 = vpop.f32.mrf.mxu0 }
 0x3d1   :  { %v4617_v57 = vpop.f32.mrf.mxu1  ;;  %v3643_v35 = vmul.f32 %v4729_v61, %v3336_v56 }
 0x3d2   :  { %v3293_v58 = vpop.f32.mrf.mxu0  ;;  %v5690_v25 = vrot.slane %v4376_v21, %v4966_v39  ;;  %v5693_v1 = vrot.slane %v4378_v55, %v4966_v39  ;;  %v5696_v0 = vrot.slane %v4380_v43, %v4966_v39  ;;  %v5699_v29 = vrot.slane %v4382_v11, %v4966_v39 }
 0x3d3   :  { %v3339_v4 = vpop.f32.mrf.mxu1 }
 0x3d4   :  { %v4612_v2 = vpop.f32.mrf.mxu0  ;;  %v4002_v20 = vcombine.low %v5690_v25, %v5693_v1  ;;  %v4034_v12 = vcombine.low %v5696_v0, %v5699_v29  ;;  %v4003_v55 = vcombine.high %v5690_v25, %v5693_v1  ;;  %v4035_v43 = vcombine.high %v5696_v0, %v5699_v29 }
 0x3d5   :  { %v4618_v10 = vpop.f32.mrf.mxu1 }
 0x3d6   :  { %v4010_v23 = vrot.slane %v4002_v20, %v4971_v46  ;;  %v4042_v16 = vrot.slane %v4034_v12, %v4971_v46  ;;  %v4017_v24 = vrot.slane %v4003_v55, %v4971_v46  ;;  %v4049_v29 = vrot.slane %v4035_v43, %v4971_v46 }
 0x3d8   :  { %v4054_v7 = vcombine.low %v4010_v23, %v4042_v16  ;;  %v4055_v40 = vcombine.high %v4010_v23, %v4042_v16 }
 0x3d9   :  { %v3382_v28 = vpop.f32.mrf.mxu0  ;;  %v3428_v17 = vpop.f32.mrf.mxu1 }
 0x3da   :  { %v3644_v33 = vmul.f32 %v4731_v22, %v3382_v28  ;;  %v3645_v34 = vmul.f32 %v4733_v47, %v3428_v17  ;;  %4220 = vrot.lane.b32.xlu0 %v4054_v7, %s4820_s2  ;;  %v4056_v28 = vcombine.low %v4017_v24, %v4049_v29 }
 0x3db   :  { %v4623_v38 = vpop.f32.mrf.mxu0  ;;  %v4629_v5 = vpop.f32.mrf.mxu1 }
 0x3dc   :  { %v3786_v31 = vcombine.low %v3642_v8, %v3644_v33  ;;  %v3787_v32 = vcombine.high %v3642_v8, %v3644_v33  ;;  %v3802_v42 = vcombine.low %v3643_v35, %v3645_v34  ;;  %v3803_v59 = vcombine.high %v3643_v35, %v3645_v34  ;;  %v2842_v33 = vpop.xlane.xlu0 %2841  ;;  %v2839_v34 = vpop.xlane.xlu1 %2838 }
 0x3dd   :  { %v3385_v9 = vpop.f32.mrf.mxu0  ;;  %v3431_v15 = vpop.f32.mrf.mxu1  ;;  %v4057_v35 = vcombine.high %v4017_v24, %v4049_v29 }
 0x3de   :  { %v3794_v6 = vrot.slane %v3786_v31, %v4966_v39  ;;  %v3801_v30 = vrot.slane %v3787_v32, %v4966_v39  ;;  %v3810_v53 = vrot.slane %v3802_v42, %v4966_v39  ;;  %v3817_v54 = vrot.slane %v3803_v59, %v4966_v39  ;;  %4228 = vrot.lane.b32.xlu0 %v4055_v40, %s4817_s26 }
 0x3df   :  { %v4624_v36 = vpop.f32.mrf.mxu0  ;;  %v4630_v48 = vpop.f32.mrf.mxu1 }
 0x3e0   :  { %v3850_v19 = vcombine.low %v3794_v6, %v3810_v53  ;;  %v3851_v27 = vcombine.high %v3794_v6, %v3810_v53  ;;  %v3866_v13 = vcombine.low %v3801_v30, %v3817_v54  ;;  %v3867_v49 = vcombine.high %v3801_v30, %v3817_v54  ;;  %v2848_v38 = vpop.xlane.xlu0 %2847 }
 0x3e1   :  { %4734 = vrcp.f32 %v2848_v38  ;;  %v2845_v5 = vpop.xlane.xlu1 %2844 }
 0x3e2   :  { %v3858_v60 = vrot.slane %v3850_v19, %v4971_v46  ;;  %v3865_v63 = vrot.slane %v3851_v27, %v4971_v46  ;;  %v3874_v3 = vrot.slane %v3866_v13, %v4971_v46  ;;  %v3881_v26 = vrot.slane %v3867_v49, %v4971_v46 }
 0x3e3   :  { %4736 = vrcp.f32 %v2842_v33 }
 0x3e4   :  { %v4383_v41 = vcombine.low %v3858_v60, %v3865_v63  ;;  %v4385_v18 = vcombine.high %v3858_v60, %v3865_v63  ;;  %v4387_v14 = vcombine.low %v3874_v3, %v3881_v26  ;;  %v4389_v62 = vcombine.high %v3874_v3, %v3881_v26 }
 0x3e5   :  { %4738 = vrcp.f32 %v2839_v34 }
 0x3e6   :  { %v4066_v51 = vrot.slane %v4383_v41, %v4966_v39  ;;  %v4082_v52 = vrot.slane %v4385_v18, %v4966_v39  ;;  %v4098_v56 = vrot.slane %v4387_v14, %v4966_v39  ;;  %v4114_v21 = vrot.slane %v4389_v62, %v4966_v39 }
 0x3e7   :  { %4740 = vrcp.f32 %v2845_v5 }
 0x3e8   :  { %v4123_v11 = vcombine.high %v4066_v51, %v4082_v52  ;;  %v4155_v44 = vcombine.high %v4098_v56, %v4114_v21  ;;  %v4122_v57 = vcombine.low %v4066_v51, %v4082_v52  ;;  %v4154_v58 = vcombine.low %v4098_v56, %v4114_v21 }
 0x3ea   :  { %v4137_v4 = vrot.slane %v4123_v11, %v4971_v46  ;;  %v4169_v2 = vrot.slane %v4155_v44, %v4971_v46  ;;  %v5728_v20 = vrot.slane %v4122_v57, %v4971_v46  ;;  %v5731_v12 = vrot.slane %v4154_v58, %v4971_v46 }
 0x3ec   :  { %v3474_v25 = vpop.f32.mrf.mxu0  ;;  %v3520_v1 = vpop.f32.mrf.mxu1  ;;  %v4188_v10 = vcombine.low %v4137_v4, %v4169_v2  ;;  %v4187_v0 = vcombine.high %v5728_v20, %v5731_v12  ;;  %v4186_v61 = vcombine.low %v5728_v20, %v5731_v12  ;;  %v4189_v7 = vcombine.high %v4137_v4, %v4169_v2 }
 0x3ee   :  { %4206 = vrot.lane.b32.xlu1 %v4188_v10, %s4822_s30  ;;  %4198 = vrot.lane.b32.xlu0 %v4187_v0, %s4823_s4  ;;  %v4635_v23 = vpop.f32.mrf.mxu0  ;;  %v4641_v16 = vpop.f32.mrf.mxu1 }
 0x3ef   :  { %v4735_v32 = vpop.eup %4734 }
 0x3f0   :  { %v3477_v22 = vpop.f32.mrf.mxu0  ;;  %v3523_v47 = vpop.f32.mrf.mxu1 }
 0x3f1   :  { %v4737_v9 = vpop.eup %4736 }
 0x3f2   :  { %4214 = vrot.lane.b32.xlu1 %v4189_v7, %s4821_s29  ;;  %4236 = vrot.lane.b32.xlu0 %v4056_v28, %s4819_s28  ;;  %v4636_v17 = vpop.f32.mrf.mxu0  ;;  %v4642_v8 = vpop.f32.mrf.mxu1  ;;  %v3647_v30 = vmul.f32 %v4737_v9, %v3520_v1 }
 0x3f3   :  { %v4739_v6 = vpop.eup %4738 }
 0x3f4   :  { %v4741_v53 = vpop.eup %4740  ;;  %v3646_v36 = vmul.f32 %v4739_v6, %v3474_v25 }
 0x3f6   :  { %4244 = vrot.lane.b32.xlu0 %v4057_v35, %s4818_s27 }
 0x411   :  { %v3612_v40 = vpop.f32.mrf.mxu1 }
 0x412   :  { %v3649_v59 = vmul.f32 %v4735_v32, %v3612_v40 }
 0x413   :  { %v4653_v31 = vpop.f32.mrf.mxu1 }
 0x414   :  { %v3834_v48 = vcombine.low %v3647_v30, %v3649_v59  ;;  %v3835_v19 = vcombine.high %v3647_v30, %v3649_v59 }
 0x415   :  { %v3615_v42 = vpop.f32.mrf.mxu1 }
 0x416   :  { %v3842_v3 = vrot.slane %v3834_v48, %v4966_v39  ;;  %v3849_v26 = vrot.slane %v3835_v19, %v4966_v39 }
 0x417   :  { %v4654_v15 = vpop.f32.mrf.mxu1 }
 0x419   :  { %v3566_v54 = vpop.f32.mrf.mxu0 }
 0x41a   :  { %v3648_v27 = vmul.f32 %v4741_v53, %v3566_v54 }
 0x41b   :  { %v4647_v13 = vpop.f32.mrf.mxu0 }
 0x41c   :  { %v3818_v49 = vcombine.low %v3646_v36, %v3648_v27  ;;  %v3819_v60 = vcombine.high %v3646_v36, %v3648_v27 }
 0x41d   :  { %v3569_v63 = vpop.f32.mrf.mxu0 }
 0x41e   :  { %v3826_v41 = vrot.slane %v3818_v49, %v4966_v39  ;;  %v3833_v18 = vrot.slane %v3819_v60, %v4966_v39 }
 0x41f   :  { %v4648_v14 = vpop.f32.mrf.mxu0 }
 0x420   :  { %v3882_v62 = vcombine.low %v3826_v41, %v3842_v3  ;;  %v3883_v51 = vcombine.high %v3826_v41, %v3842_v3  ;;  %v3898_v52 = vcombine.low %v3833_v18, %v3849_v26  ;;  %v3899_v56 = vcombine.high %v3833_v18, %v3849_v26 }
 0x422   :  { %v3890_v21 = vrot.slane %v3882_v62, %v4971_v46  ;;  %v3897_v55 = vrot.slane %v3883_v51, %v4971_v46  ;;  %v3906_v43 = vrot.slane %v3898_v52, %v4971_v46  ;;  %v3913_v11 = vrot.slane %v3899_v56, %v4971_v46 }
 0x424   :  { %v4384_v44 = vcombine.low %v3890_v21, %v3897_v55  ;;  %v4386_v57 = vcombine.high %v3890_v21, %v3897_v55  ;;  %v4388_v58 = vcombine.low %v3906_v43, %v3913_v11  ;;  %v4390_v4 = vcombine.high %v3906_v43, %v3913_v11 }
 0x426   :  { %v4073_v2 = vrot.slane %v4384_v44, %v4966_v39  ;;  %v4089_v24 = vrot.slane %v4386_v57, %v4966_v39  ;;  %v4105_v25 = vrot.slane %v4388_v58, %v4966_v39  ;;  %v4121_v1 = vrot.slane %v4390_v4, %v4966_v39 }
 0x428   :  { %v4138_v10 = vcombine.low %v4073_v2, %v4089_v24  ;;  %v4170_v0 = vcombine.low %v4105_v25, %v4121_v1  ;;  %v4139_v22 = vcombine.high %v4073_v2, %v4089_v24  ;;  %v4171_v47 = vcombine.high %v4105_v25, %v4121_v1 }
 0x42a   :  { %v4146_v29 = vrot.slane %v4138_v10, %v4971_v46  ;;  %v4178_v23 = vrot.slane %v4170_v0, %v4971_v46  ;;  %v4153_v28 = vrot.slane %v4139_v22, %v4971_v46  ;;  %v4185_v17 = vrot.slane %v4171_v47, %v4971_v46 }
 0x42c   :  { %v4190_v16 = vcombine.low %v4146_v29, %v4178_v23  ;;  %v4191_v7 = vcombine.high %v4146_v29, %v4178_v23  ;;  %v4192_v8 = vcombine.low %v4153_v28, %v4185_v17  ;;  %v4193_v39 = vcombine.high %v4153_v28, %v4185_v17 }
 0x42e   :  { %4222 = vrot.lane.b32.xlu1 %v4190_v16, %s4820_s2 }
 0x432   :  { %4230 = vrot.lane.b32.xlu1 %v4191_v7, %s4817_s26 }
 0x436   :  { %4238 = vrot.lane.b32.xlu1 %v4192_v8, %s4819_s28 }
 0x439   :  { %v4213_v35 = vpop.permute.xlu0 %4212  ;;  %v4197_v33 = vpop.permute.xlu1 %4196 }
 0x43a   :  { %4246 = vrot.lane.b32.xlu1 %v4193_v39, %s4818_s27  ;;  %v4250_v46 = vsel %vm84_vm1, %v4050_v37, %v4197_v33 }
 0x43d   :  { %v4205_v38 = vpop.permute.xlu1 %4204 }
 0x43e   :  { %v4253_v42 = vsel %vm4252_vm4, %v4250_v46, %v4205_v38 }
 0x43f   :  { %v4256_v6 = vsel %vm4255_vm5, %v4253_v42, %v4213_v35 }
 0x44c   :  { %v4221_v34 = vpop.permute.xlu0 %4220 }
 0x44d   :  { %v4259_v53 = vsel %vm4258_vm6, %v4256_v6, %v4221_v34 }
 0x450   :  { %v4229_v5 = vpop.permute.xlu0 %4228 }
 0x451   :  { %v4262_v50 = vsel %vm4261_vm7, %v4259_v53, %v4229_v5 }
 0x460   :  { %v4199_v40 = vpop.permute.xlu0 %4198  ;;  %v4207_v31 = vpop.permute.xlu1 %4206 }
 0x461   :  { %v4251_v32 = vsel %vm84_vm1, %v4186_v61, %v4199_v40 }
 0x462   :  { %v4254_v59 = vsel %vm4252_vm4, %v4251_v32, %v4207_v31 }
 0x464   :  { %v4237_v9 = vpop.permute.xlu0 %4236  ;;  %v4215_v15 = vpop.permute.xlu1 %4214 }
 0x465   :  { %v4257_v30 = vsel %vm4255_vm5, %v4254_v59, %v4215_v15  ;;  %v4265_v45 = vsel %vm4264_vm8, %v4262_v50, %v4237_v9 }
 0x468   :  { %v4245_v37 = vpop.permute.xlu0 %4244 }
 0x469   :  { %v4268_v20 = vsel %vm4267_vm9, %v4265_v45, %v4245_v37 }
 0x46a   :  { %4270 = vst [vmem:[#allocation7] sm:$0xff] %v4268_v20 }
 0x4a0   :  { %v4223_v12 = vpop.permute.xlu1 %4222 }
 0x4a1   :  { %v4260_v36 = vsel %vm4258_vm6, %v4257_v30, %v4223_v12 }
 0x4a4   :  { %v4231_v61 = vpop.permute.xlu1 %4230 }
 0x4a5   :  { %v4263_v48 = vsel %vm4261_vm7, %v4260_v36, %v4231_v61 }
 0x4a8   :  { %v4239_v54 = vpop.permute.xlu1 %4238 }
 0x4a9   :  { %v4266_v19 = vsel %vm4264_vm8, %v4263_v48, %v4239_v54 }
 0x4ac   :  { %v4247_v27 = vpop.permute.xlu1 %4246 }
 0x4ad   :  { %v4269_v13 = vsel %vm4267_vm9, %v4266_v19, %v4247_v27 }
 0x4ae   :  { %4271 = vst [vmem:[#allocation7 + $0x8] sm:$0xff] %v4269_v13 }
 0x4af   :  { %4793 = shalt.err (!%p4790_p0)
}
 0x4b0   :  { %4283 = dma.vmem_to_hbm [thread:$0]  %s4278_s6, 256, %s5789_s3, [#allocation4], %s4809_s15, %s4809_s15, %s4810_s16  }
 0x4b1   :  { %4806 = dma.done.wait [#allocation4], 256  }
 0x4b2   :  { %4807 = vsyncadd [#allocation4], 4294967040 }
 0x4b3   :  { %4287 = vsyncpa [#allocation3], 1 }
 0x4b4   :  { %4288 = vsyncpa [#allocation6], 1 }
 0x4b5   :  { %4289 = vsyncpa [#allocation4], 1 }

</bundles_post_ra>
